<compile_context>
chip_gen: v7x
topology: tpu7x:2x2x1
jax: 0.10.0
libtpu: 0.0.40
codegen_flags: <defaults>
</compile_context>

<pallas_src>
import functools

import jax
import jax.numpy as jnp
from jax import lax
from jax.experimental import pallas as pl
from jax.experimental.pallas import tpu as pltpu


# ----------------------------------------------------------------------------
# Kernel 1: direct conv over one output-row tile (tap-wise MXU matmuls,
# f32 accumulation into a VMEM scratch) + fused per-tile BN partial sums.
# ----------------------------------------------------------------------------
def conv_bnstats_kernel(x_ref, w_ref, y_ref, s1_ref, s2_ref, acc_ref, *,
                        kh, kw, th, ow):
    cin = x_ref.shape[-1]
    cout = acc_ref.shape[-1]

    r = pl.program_id(1)
    row0 = r * th
    if th % 8 == 0:
        row0 = pl.multiple_of(row0, 8)

    wv = w_ref[...]                                    # (KH, KW, Cin, Cout) bf16

    for i in range(kh):                                # static unroll: KH*KW taps
        xwin = x_ref[0, pl.ds(row0 + i, th), :, :]     # (th, Wp, Cin) bf16
        for j in range(kw):
            xs = xwin[:, j:j + ow, :].reshape(th * ow, cin)      # (rows, Cin)
            contrib = jnp.dot(xs, wv[i, j],
                              preferred_element_type=jnp.float32)
            if i == 0 and j == 0:
                acc_ref[...] = contrib                 # init (scratch persists)
            else:
                acc_ref[...] += contrib

    acc = acc_ref[...]                                 # (rows, Cout) f32
    y_ref[...] = acc.astype(y_ref.dtype)               # bf16 intermediate store

    # Per-(image, row-tile) BN partial sums from the f32 accumulator.
    s1 = jnp.sum(acc, axis=0, keepdims=True)           # (1, Cout)
    s2 = jnp.sum(acc * acc, axis=0, keepdims=True)     # (1, Cout)
    s1_ref[0] = jnp.broadcast_to(s1, (8, cout))
    s2_ref[0] = jnp.broadcast_to(s2, (8, cout))


# ----------------------------------------------------------------------------
# Kernel 2: pure streaming normalize (precomputed scale/shift) + LeakyReLU.
# ----------------------------------------------------------------------------
def bn_lrelu_kernel(y_ref, scale_ref, shift_ref, o_ref, *, neg_slope):
    yn = y_ref[...].astype(jnp.float32) * scale_ref[...] + shift_ref[...]
    o_ref[...] = jnp.where(yn >= 0, yn, neg_slope * yn)


# ----------------------------------------------------------------------------
# Wrapper
# ----------------------------------------------------------------------------
def _pick_row_tile(oh, ow, cap_rows=4096):
    """Largest proper divisor t of OH whose (t*OW, Cout) row block is
    sublane-aligned (mult of 16 for bf16) and modest in VMEM; falls back to
    the whole image (awkward tiny/prime shapes)."""
    for t in range(oh - 1, 0, -1):
        if oh % t == 0 and (t * ow) % 16 == 0 and t * ow <= cap_rows:
            return t
    return oh


def conv_block_forward(x_nchw, weight, bias, gamma, beta, *, stride, padding,
                       neg_slope=0.2, eps=1e-5):
    """ConvBlock forward (train-mode BN).  x_nchw: (N, Cin, H, W);
    weight: (Cout, Cin, KH, KW) (PyTorch layout); bias/gamma/beta: (Cout,)."""
    n, cin, h, w = x_nchw.shape
    cout, cin_w, kh, kw = weight.shape
    assert cin_w == cin

    oh = (h + 2 * padding - kh) // stride + 1
    ow = (w + 2 * padding - kw) // stride + 1
    m = n * oh * ow

    # Conv bias dropped: a per-channel constant added before train-mode BN
    # (batch-mean subtraction) cancels exactly.  (Must be re-added for
    # eval-mode / running-stats BN.)
    del bias

    gamma = gamma.astype(jnp.float32)
    beta = beta.astype(jnp.float32)

    if stride == 1:
        hp, wp = h + 2 * padding, w + 2 * padding
        # NHWC + halo zero-pad; bf16 for MXU/DMA (f32 accumulation in-kernel).
        x = jnp.transpose(x_nchw, (0, 2, 3, 1)).astype(jnp.bfloat16)
        xp = jnp.pad(x, ((0, 0), (padding, padding), (padding, padding), (0, 0)))
        # (Cout,Cin,KH,KW) -> (KH,KW,Cin,Cout), bf16.
        w_taps = jnp.transpose(weight, (2, 3, 1, 0)).astype(jnp.bfloat16)

        th = _pick_row_tile(oh, ow)
        r_tiles = oh // th
        rows = th * ow

        k1 = functools.partial(conv_bnstats_kernel, kh=kh, kw=kw, th=th, ow=ow)
        conv_out, s1_all, s2_all = pl.pallas_call(
            k1,
            out_shape=(
                jax.ShapeDtypeStruct((m, cout), jnp.bfloat16),
                jax.ShapeDtypeStruct((n * r_tiles, 8, cout), jnp.float32),
                jax.ShapeDtypeStruct((n * r_tiles, 8, cout), jnp.float32),
            ),
            grid_spec=pltpu.PrefetchScalarGridSpec(
                num_scalar_prefetch=0,
                grid=(n, r_tiles),
                in_specs=[
                    # Whole padded image; index_map ignores the row-tile axis so
                    # the image is DMA'd once per image and revisited across
                    # row tiles (switch to halo-row manual DMA if Hp*Wp*Cin
                    # ever approaches the VMEM budget).
                    pl.BlockSpec((1, hp, wp, cin), lambda b, r: (b, 0, 0, 0)),
                    pl.BlockSpec((kh, kw, cin, cout), lambda b, r: (0, 0, 0, 0)),
                ],
                out_specs=(
                    pl.BlockSpec((rows, cout),
                                 lambda b, r: (b * r_tiles + r, 0)),
                    pl.BlockSpec((1, 8, cout),
                                 lambda b, r: (b * r_tiles + r, 0, 0)),
                    pl.BlockSpec((1, 8, cout),
                                 lambda b, r: (b * r_tiles + r, 0, 0)),
                ),
                scratch_shapes=[pltpu.VMEM((rows, cout), jnp.float32)],
            ),
            compiler_params=pltpu.CompilerParams(
                dimension_semantics=("parallel", "parallel"),
                vmem_limit_bytes=48 * 1024 * 1024),
        )(xp, w_taps)

        s1_tot = jnp.sum(s1_all[:, 0, :], axis=0)      # (Cout,) f32
        s2_tot = jnp.sum(s2_all[:, 0, :], axis=0)
    else:
        # TODO(synk): Pallas path for stride>1 (host-side space-to-batch phase
        # split keeps every tap slice contiguous); XLA conv fallback for now.
        yc = lax.conv_general_dilated(
            x_nchw.astype(jnp.float32), weight.astype(jnp.float32),
            window_strides=(stride, stride),
            padding=[(padding, padding), (padding, padding)],
            dimension_numbers=("NCHW", "OIHW", "NCHW"))
        conv_nhwc = jnp.transpose(yc, (0, 2, 3, 1))
        conv_out = conv_nhwc.reshape(m, cout).astype(jnp.bfloat16)
        s1_tot = jnp.sum(conv_nhwc, axis=(0, 1, 2))
        s2_tot = jnp.sum(conv_nhwc * conv_nhwc, axis=(0, 1, 2))

    # Tiny host-side reduction of the fused stats -> per-channel scale/shift
    # (hoisted out of kernel 2 so it is a pure streaming kernel).
    inv_m = 1.0 / float(m)
    mean = s1_tot * inv_m
    var = jnp.maximum(s2_tot * inv_m - mean * mean, 0.0)     # biased variance
    scale = gamma * lax.rsqrt(var + eps)
    shift = beta - mean * scale
    scale_row = scale.reshape(1, cout)
    shift_row = shift.reshape(1, cout)

    # Kernel 2: normalize + LeakyReLU, 1024-row tiles, cdiv grid.
    tm = 1024 if m >= 1024 else m
    k2 = functools.partial(bn_lrelu_kernel, neg_slope=neg_slope)
    y = pl.pallas_call(
        k2,
        out_shape=jax.ShapeDtypeStruct((m, cout), jnp.float32),
        grid_spec=pltpu.PrefetchScalarGridSpec(
            num_scalar_prefetch=0,
            grid=(pl.cdiv(m, tm),),
            in_specs=[
                pl.BlockSpec((tm, cout), lambda i: (i, 0)),
                pl.BlockSpec((1, cout), lambda i: (0, 0)),
                pl.BlockSpec((1, cout), lambda i: (0, 0)),
            ],
            out_specs=pl.BlockSpec((tm, cout), lambda i: (i, 0)),
        ),
        compiler_params=pltpu.CompilerParams(
            dimension_semantics=("parallel",)),
    )(conv_out, scale_row, shift_row)

    # Back to NCHW to match the PyTorch module's output layout.
    # TODO(synk): emit NCHW (or keep NHWC when chaining ConvBlocks) straight
    # from kernel 2 to avoid this extra XLA pass over the final activation.
    out_nhwc = y.reshape(n, oh, ow, cout)
    return jnp.transpose(out_nhwc, (0, 3, 1, 2))


# ----------------------------------------------------------------------------
# Pure-JAX reference (no torch) -- keeps the conv bias to prove it cancels.
# ----------------------------------------------------------------------------
def conv_block_ref(x_nchw, weight, bias, gamma, beta, *, stride, padding,
                   neg_slope=0.2, eps=1e-5):
    y = lax.conv_general_dilated(
        x_nchw.astype(jnp.float32), weight.astype(jnp.float32),
        window_strides=(stride, stride),
        padding=[(padding, padding), (padding, padding)],
        dimension_numbers=("NCHW", "OIHW", "NCHW"))
    y = y + bias.reshape(1, -1, 1, 1)
    mean = jnp.mean(y, axis=(0, 2, 3), keepdims=True)
    var = jnp.mean((y - mean) ** 2, axis=(0, 2, 3), keepdims=True)
    yn = (y - mean) * lax.rsqrt(var + eps)
    yn = yn * gamma.reshape(1, -1, 1, 1) + beta.reshape(1, -1, 1, 1)
    return jnp.where(yn >= 0, yn, neg_slope * yn)


if __name__ == "__main__":
    # ConvBlock(input_dim=4, output_dim=8, kernel_size=3, stride=1, padding=1,
    #           activation='lrelu', use_bias=True)
    N, CIN, H, W = 2, 4, 16, 16
    COUT, KH, KW = 8, 3, 3
    STRIDE, PAD = 1, 1

    key = jax.random.PRNGKey(0)
    kx, kw_, kb, kg, kbe = jax.random.split(key, 5)
    x = jax.random.normal(kx, (N, CIN, H, W), dtype=jnp.float32)
    weight = jax.random.normal(kw_, (COUT, CIN, KH, KW), dtype=jnp.float32) * 0.1
    bias = jax.random.normal(kb, (COUT,), dtype=jnp.float32) * 0.1
    gamma = 1.0 + 0.1 * jax.random.normal(kg, (COUT,), dtype=jnp.float32)
    beta = 0.1 * jax.random.normal(kbe, (COUT,), dtype=jnp.float32)

    out = conv_block_forward(x, weight, bias, gamma, beta,
                             stride=STRIDE, padding=PAD)
    out = jax.block_until_ready(out)

    ref = conv_block_ref(x, weight, bias, gamma, beta,
                         stride=STRIDE, padding=PAD)
    assert out.shape == (N, COUT, H, W)

    # bf16 MXU inputs + bf16 conv_out intermediate -> tolerances relaxed vs the
    # old all-f32 path (errors here are pure bf16 rounding, not structural).
    max_err = float(jnp.max(jnp.abs(out - ref)))
    mean_err = float(jnp.mean(jnp.abs(out - ref)))
    assert max_err < 1e-1 and mean_err < 2e-2, (max_err, mean_err)

    print("KERNEL_OK")
</pallas_src>

<mosaic_0001>
module attributes {stable_mosaic.version = 11 : i64} {
  func.func @conv_bnstats_kernel(%arg0: i32, %arg1: i32, %arg2: memref<1x18x18x4xbf16, #tpu.memory_space<vmem>>, %arg3: memref<3x3x4x8xbf16, #tpu.memory_space<vmem>>, %arg4: memref<128x8xbf16, #tpu.memory_space<vmem>>, %arg5: memref<1x8x8xf32, #tpu.memory_space<vmem>>, %arg6: memref<1x8x8xf32, #tpu.memory_space<vmem>>, %arg7: memref<128x8xf32, #tpu.memory_space<vmem>>) attributes {dimension_semantics = [#tpu.dimension_semantics<parallel>, #tpu.dimension_semantics<parallel>], iteration_bounds = array<i64: 2, 2>, scalar_prefetch = 0 : i64, scratch_operands = 1 : i64, tpu.core_type = #tpu.core_type<tc>, window_params = [{transform_indices = @transform_0, window_bounds = array<i64: 1, 18, 18, 4>}, {pipeline_mode = #tpu.pipeline_mode<synchronous>, transform_indices = @transform_1, window_bounds = array<i64: 3, 3, 4, 8>}, {transform_indices = @transform_2, window_bounds = array<i64: 128, 8>}, {transform_indices = @transform_3, window_bounds = array<i64: 1, 8, 8>}, {transform_indices = @transform_4, window_bounds = array<i64: 1, 8, 8>}]} {
    %c8_i32 = arith.constant 8 : i32
    %0 = arith.muli %arg1, %c8_i32 : i32
    %1 = tpu.assume_multiple %0, 8 : i32
    %c0 = arith.constant 0 : index
    %c0_0 = arith.constant 0 : index
    %c0_1 = arith.constant 0 : index
    %c0_2 = arith.constant 0 : index
    %2 = vector.load %arg3[%c0, %c0_0, %c0_1, %c0_2] : memref<3x3x4x8xbf16, #tpu.memory_space<vmem>>, vector<3x3x4x8xbf16>
    %c0_i32 = arith.constant 0 : i32
    %3 = arith.addi %1, %c0_i32 : i32
    %c0_3 = arith.constant 0 : index
    %4 = arith.index_cast %3 : i32 to index
    %c0_4 = arith.constant 0 : index
    %c0_5 = arith.constant 0 : index
    %5 = vector.load %arg2[%c0_3, %4, %c0_4, %c0_5] : memref<1x18x18x4xbf16, #tpu.memory_space<vmem>>, vector<1x8x18x4xbf16>
    %6 = vector.shape_cast %5 : vector<1x8x18x4xbf16> to vector<8x18x4xbf16>
    %7 = vector.extract_strided_slice %6 {offsets = [0, 0, 0], sizes = [8, 16, 4], strides = [1, 1, 1]} : vector<8x18x4xbf16> to vector<8x16x4xbf16>
    %8 = vector.shape_cast %7 : vector<8x16x4xbf16> to vector<128x4xbf16>
    %9 = vector.extract_strided_slice %2 {offsets = [0, 0, 0, 0], sizes = [1, 1, 4, 8], strides = [1, 1, 1, 1]} : vector<3x3x4x8xbf16> to vector<1x1x4x8xbf16>
    %10 = vector.shape_cast %9 : vector<1x1x4x8xbf16> to vector<4x8xbf16>
    %cst = arith.constant dense<0.000000e+00> : vector<128x8xf32>
    %11 = tpu.matmul %8, %10, %cst {dimension_numbers = #tpu.dot_dimension_numbers<[1], [0], [0], [1], [0, 0, 1, 1], [], []>} : vector<128x4xbf16>, vector<4x8xbf16>, vector<128x8xf32> -> vector<128x8xf32>
    %c0_6 = arith.constant 0 : index
    %c0_7 = arith.constant 0 : index
    %12 = vector.load %arg7[%c0_6, %c0_7] : memref<128x8xf32, #tpu.memory_space<vmem>>, vector<128x8xf32>
    tpu.vector_store %arg7[%c0_6, %c0_7], %11 {strides = array<i32>} : memref<128x8xf32, #tpu.memory_space<vmem>>, vector<128x8xf32>,
    %13 = vector.extract_strided_slice %6 {offsets = [0, 1, 0], sizes = [8, 16, 4], strides = [1, 1, 1]} : vector<8x18x4xbf16> to vector<8x16x4xbf16>
    %14 = vector.shape_cast %13 : vector<8x16x4xbf16> to vector<128x4xbf16>
    %15 = vector.extract_strided_slice %2 {offsets = [0, 1, 0, 0], sizes = [1, 1, 4, 8], strides = [1, 1, 1, 1]} : vector<3x3x4x8xbf16> to vector<1x1x4x8xbf16>
    %16 = vector.shape_cast %15 : vector<1x1x4x8xbf16> to vector<4x8xbf16>
    %cst_8 = arith.constant dense<0.000000e+00> : vector<128x8xf32>
    %17 = tpu.matmul %14, %16, %cst_8 {dimension_numbers = #tpu.dot_dimension_numbers<[1], [0], [0], [1], [0, 0, 1, 1], [], []>} : vector<128x4xbf16>, vector<4x8xbf16>, vector<128x8xf32> -> vector<128x8xf32>
    %c0_9 = arith.constant 0 : index
    %c0_10 = arith.constant 0 : index
    %18 = vector.load %arg7[%c0_9, %c0_10] : memref<128x8xf32, #tpu.memory_space<vmem>>, vector<128x8xf32>
    %19 = arith.addf %18, %17 : vector<128x8xf32>
    %c0_11 = arith.constant 0 : index
    %c0_12 = arith.constant 0 : index
    %20 = vector.load %arg7[%c0_11, %c0_12] : memref<128x8xf32, #tpu.memory_space<vmem>>, vector<128x8xf32>
    tpu.vector_store %arg7[%c0_11, %c0_12], %19 {strides = array<i32>} : memref<128x8xf32, #tpu.memory_space<vmem>>, vector<128x8xf32>,
    %21 = vector.extract_strided_slice %6 {offsets = [0, 2, 0], sizes = [8, 16, 4], strides = [1, 1, 1]} : vector<8x18x4xbf16> to vector<8x16x4xbf16>
    %22 = vector.shape_cast %21 : vector<8x16x4xbf16> to vector<128x4xbf16>
    %23 = vector.extract_strided_slice %2 {offsets = [0, 2, 0, 0], sizes = [1, 1, 4, 8], strides = [1, 1, 1, 1]} : vector<3x3x4x8xbf16> to vector<1x1x4x8xbf16>
    %24 = vector.shape_cast %23 : vector<1x1x4x8xbf16> to vector<4x8xbf16>
    %cst_13 = arith.constant dense<0.000000e+00> : vector<128x8xf32>
    %25 = tpu.matmul %22, %24, %cst_13 {dimension_numbers = #tpu.dot_dimension_numbers<[1], [0], [0], [1], [0, 0, 1, 1], [], []>} : vector<128x4xbf16>, vector<4x8xbf16>, vector<128x8xf32> -> vector<128x8xf32>
    %c0_14 = arith.constant 0 : index
    %c0_15 = arith.constant 0 : index
    %26 = vector.load %arg7[%c0_14, %c0_15] : memref<128x8xf32, #tpu.memory_space<vmem>>, vector<128x8xf32>
    %27 = arith.addf %26, %25 : vector<128x8xf32>
    %c0_16 = arith.constant 0 : index
    %c0_17 = arith.constant 0 : index
    %28 = vector.load %arg7[%c0_16, %c0_17] : memref<128x8xf32, #tpu.memory_space<vmem>>, vector<128x8xf32>
    tpu.vector_store %arg7[%c0_16, %c0_17], %27 {strides = array<i32>} : memref<128x8xf32, #tpu.memory_space<vmem>>, vector<128x8xf32>,
    %c1_i32 = arith.constant 1 : i32
    %29 = arith.addi %1, %c1_i32 : i32
    %c0_18 = arith.constant 0 : index
    %30 = arith.index_cast %29 : i32 to index
    %c0_19 = arith.constant 0 : index
    %c0_20 = arith.constant 0 : index
    %31 = vector.load %arg2[%c0_18, %30, %c0_19, %c0_20] : memref<1x18x18x4xbf16, #tpu.memory_space<vmem>>, vector<1x8x18x4xbf16>
    %32 = vector.shape_cast %31 : vector<1x8x18x4xbf16> to vector<8x18x4xbf16>
    %33 = vector.extract_strided_slice %32 {offsets = [0, 0, 0], sizes = [8, 16, 4], strides = [1, 1, 1]} : vector<8x18x4xbf16> to vector<8x16x4xbf16>
    %34 = vector.shape_cast %33 : vector<8x16x4xbf16> to vector<128x4xbf16>
    %35 = vector.extract_strided_slice %2 {offsets = [1, 0, 0, 0], sizes = [1, 1, 4, 8], strides = [1, 1, 1, 1]} : vector<3x3x4x8xbf16> to vector<1x1x4x8xbf16>
    %36 = vector.shape_cast %35 : vector<1x1x4x8xbf16> to vector<4x8xbf16>
    %cst_21 = arith.constant dense<0.000000e+00> : vector<128x8xf32>
    %37 = tpu.matmul %34, %36, %cst_21 {dimension_numbers = #tpu.dot_dimension_numbers<[1], [0], [0], [1], [0, 0, 1, 1], [], []>} : vector<128x4xbf16>, vector<4x8xbf16>, vector<128x8xf32> -> vector<128x8xf32>
    %c0_22 = arith.constant 0 : index
    %c0_23 = arith.constant 0 : index
    %38 = vector.load %arg7[%c0_22, %c0_23] : memref<128x8xf32, #tpu.memory_space<vmem>>, vector<128x8xf32>
    %39 = arith.addf %38, %37 : vector<128x8xf32>
    %c0_24 = arith.constant 0 : index
    %c0_25 = arith.constant 0 : index
    %40 = vector.load %arg7[%c0_24, %c0_25] : memref<128x8xf32, #tpu.memory_space<vmem>>, vector<128x8xf32>
    tpu.vector_store %arg7[%c0_24, %c0_25], %39 {strides = array<i32>} : memref<128x8xf32, #tpu.memory_space<vmem>>, vector<128x8xf32>,
    %41 = vector.extract_strided_slice %32 {offsets = [0, 1, 0], sizes = [8, 16, 4], strides = [1, 1, 1]} : vector<8x18x4xbf16> to vector<8x16x4xbf16>
    %42 = vector.shape_cast %41 : vector<8x16x4xbf16> to vector<128x4xbf16>
    %43 = vector.extract_strided_slice %2 {offsets = [1, 1, 0, 0], sizes = [1, 1, 4, 8], strides = [1, 1, 1, 1]} : vector<3x3x4x8xbf16> to vector<1x1x4x8xbf16>
    %44 = vector.shape_cast %43 : vector<1x1x4x8xbf16> to vector<4x8xbf16>
    %cst_26 = arith.constant dense<0.000000e+00> : vector<128x8xf32>
    %45 = tpu.matmul %42, %44, %cst_26 {dimension_numbers = #tpu.dot_dimension_numbers<[1], [0], [0], [1], [0, 0, 1, 1], [], []>} : vector<128x4xbf16>, vector<4x8xbf16>, vector<128x8xf32> -> vector<128x8xf32>
    %c0_27 = arith.constant 0 : index
    %c0_28 = arith.constant 0 : index
    %46 = vector.load %arg7[%c0_27, %c0_28] : memref<128x8xf32, #tpu.memory_space<vmem>>, vector<128x8xf32>
    %47 = arith.addf %46, %45 : vector<128x8xf32>
    %c0_29 = arith.constant 0 : index
    %c0_30 = arith.constant 0 : index
    %48 = vector.load %arg7[%c0_29, %c0_30] : memref<128x8xf32, #tpu.memory_space<vmem>>, vector<128x8xf32>
    tpu.vector_store %arg7[%c0_29, %c0_30], %47 {strides = array<i32>} : memref<128x8xf32, #tpu.memory_space<vmem>>, vector<128x8xf32>,
    %49 = vector.extract_strided_slice %32 {offsets = [0, 2, 0], sizes = [8, 16, 4], strides = [1, 1, 1]} : vector<8x18x4xbf16> to vector<8x16x4xbf16>
    %50 = vector.shape_cast %49 : vector<8x16x4xbf16> to vector<128x4xbf16>
    %51 = vector.extract_strided_slice %2 {offsets = [1, 2, 0, 0], sizes = [1, 1, 4, 8], strides = [1, 1, 1, 1]} : vector<3x3x4x8xbf16> to vector<1x1x4x8xbf16>
    %52 = vector.shape_cast %51 : vector<1x1x4x8xbf16> to vector<4x8xbf16>
    %cst_31 = arith.constant dense<0.000000e+00> : vector<128x8xf32>
    %53 = tpu.matmul %50, %52, %cst_31 {dimension_numbers = #tpu.dot_dimension_numbers<[1], [0], [0], [1], [0, 0, 1, 1], [], []>} : vector<128x4xbf16>, vector<4x8xbf16>, vector<128x8xf32> -> vector<128x8xf32>
    %c0_32 = arith.constant 0 : index
    %c0_33 = arith.constant 0 : index
    %54 = vector.load %arg7[%c0_32, %c0_33] : memref<128x8xf32, #tpu.memory_space<vmem>>, vector<128x8xf32>
    %55 = arith.addf %54, %53 : vector<128x8xf32>
    %c0_34 = arith.constant 0 : index
    %c0_35 = arith.constant 0 : index
    %56 = vector.load %arg7[%c0_34, %c0_35] : memref<128x8xf32, #tpu.memory_space<vmem>>, vector<128x8xf32>
    tpu.vector_store %arg7[%c0_34, %c0_35], %55 {strides = array<i32>} : memref<128x8xf32, #tpu.memory_space<vmem>>, vector<128x8xf32>,
    %c2_i32 = arith.constant 2 : i32
    %57 = arith.addi %1, %c2_i32 : i32
    %c0_36 = arith.constant 0 : index
    %58 = arith.index_cast %57 : i32 to index
    %c0_37 = arith.constant 0 : index
    %c0_38 = arith.constant 0 : index
    %59 = vector.load %arg2[%c0_36, %58, %c0_37, %c0_38] : memref<1x18x18x4xbf16, #tpu.memory_space<vmem>>, vector<1x8x18x4xbf16>
    %60 = vector.shape_cast %59 : vector<1x8x18x4xbf16> to vector<8x18x4xbf16>
    %61 = vector.extract_strided_slice %60 {offsets = [0, 0, 0], sizes = [8, 16, 4], strides = [1, 1, 1]} : vector<8x18x4xbf16> to vector<8x16x4xbf16>
    %62 = vector.shape_cast %61 : vector<8x16x4xbf16> to vector<128x4xbf16>
    %63 = vector.extract_strided_slice %2 {offsets = [2, 0, 0, 0], sizes = [1, 1, 4, 8], strides = [1, 1, 1, 1]} : vector<3x3x4x8xbf16> to vector<1x1x4x8xbf16>
    %64 = vector.shape_cast %63 : vector<1x1x4x8xbf16> to vector<4x8xbf16>
    %cst_39 = arith.constant dense<0.000000e+00> : vector<128x8xf32>
    %65 = tpu.matmul %62, %64, %cst_39 {dimension_numbers = #tpu.dot_dimension_numbers<[1], [0], [0], [1], [0, 0, 1, 1], [], []>} : vector<128x4xbf16>, vector<4x8xbf16>, vector<128x8xf32> -> vector<128x8xf32>
    %c0_40 = arith.constant 0 : index
    %c0_41 = arith.constant 0 : index
    %66 = vector.load %arg7[%c0_40, %c0_41] : memref<128x8xf32, #tpu.memory_space<vmem>>, vector<128x8xf32>
    %67 = arith.addf %66, %65 : vector<128x8xf32>
    %c0_42 = arith.constant 0 : index
    %c0_43 = arith.constant 0 : index
    %68 = vector.load %arg7[%c0_42, %c0_43] : memref<128x8xf32, #tpu.memory_space<vmem>>, vector<128x8xf32>
    tpu.vector_store %arg7[%c0_42, %c0_43], %67 {strides = array<i32>} : memref<128x8xf32, #tpu.memory_space<vmem>>, vector<128x8xf32>,
    %69 = vector.extract_strided_slice %60 {offsets = [0, 1, 0], sizes = [8, 16, 4], strides = [1, 1, 1]} : vector<8x18x4xbf16> to vector<8x16x4xbf16>
    %70 = vector.shape_cast %69 : vector<8x16x4xbf16> to vector<128x4xbf16>
    %71 = vector.extract_strided_slice %2 {offsets = [2, 1, 0, 0], sizes = [1, 1, 4, 8], strides = [1, 1, 1, 1]} : vector<3x3x4x8xbf16> to vector<1x1x4x8xbf16>
    %72 = vector.shape_cast %71 : vector<1x1x4x8xbf16> to vector<4x8xbf16>
    %cst_44 = arith.constant dense<0.000000e+00> : vector<128x8xf32>
    %73 = tpu.matmul %70, %72, %cst_44 {dimension_numbers = #tpu.dot_dimension_numbers<[1], [0], [0], [1], [0, 0, 1, 1], [], []>} : vector<128x4xbf16>, vector<4x8xbf16>, vector<128x8xf32> -> vector<128x8xf32>
    %c0_45 = arith.constant 0 : index
    %c0_46 = arith.constant 0 : index
    %74 = vector.load %arg7[%c0_45, %c0_46] : memref<128x8xf32, #tpu.memory_space<vmem>>, vector<128x8xf32>
    %75 = arith.addf %74, %73 : vector<128x8xf32>
    %c0_47 = arith.constant 0 : index
    %c0_48 = arith.constant 0 : index
    %76 = vector.load %arg7[%c0_47, %c0_48] : memref<128x8xf32, #tpu.memory_space<vmem>>, vector<128x8xf32>
    tpu.vector_store %arg7[%c0_47, %c0_48], %75 {strides = array<i32>} : memref<128x8xf32, #tpu.memory_space<vmem>>, vector<128x8xf32>,
    %77 = vector.extract_strided_slice %60 {offsets = [0, 2, 0], sizes = [8, 16, 4], strides = [1, 1, 1]} : vector<8x18x4xbf16> to vector<8x16x4xbf16>
    %78 = vector.shape_cast %77 : vector<8x16x4xbf16> to vector<128x4xbf16>
    %79 = vector.extract_strided_slice %2 {offsets = [2, 2, 0, 0], sizes = [1, 1, 4, 8], strides = [1, 1, 1, 1]} : vector<3x3x4x8xbf16> to vector<1x1x4x8xbf16>
    %80 = vector.shape_cast %79 : vector<1x1x4x8xbf16> to vector<4x8xbf16>
    %cst_49 = arith.constant dense<0.000000e+00> : vector<128x8xf32>
    %81 = tpu.matmul %78, %80, %cst_49 {dimension_numbers = #tpu.dot_dimension_numbers<[1], [0], [0], [1], [0, 0, 1, 1], [], []>} : vector<128x4xbf16>, vector<4x8xbf16>, vector<128x8xf32> -> vector<128x8xf32>
    %c0_50 = arith.constant 0 : index
    %c0_51 = arith.constant 0 : index
    %82 = vector.load %arg7[%c0_50, %c0_51] : memref<128x8xf32, #tpu.memory_space<vmem>>, vector<128x8xf32>
    %83 = arith.addf %82, %81 : vector<128x8xf32>
    %c0_52 = arith.constant 0 : index
    %c0_53 = arith.constant 0 : index
    %84 = vector.load %arg7[%c0_52, %c0_53] : memref<128x8xf32, #tpu.memory_space<vmem>>, vector<128x8xf32>
    tpu.vector_store %arg7[%c0_52, %c0_53], %83 {strides = array<i32>} : memref<128x8xf32, #tpu.memory_space<vmem>>, vector<128x8xf32>,
    %c0_54 = arith.constant 0 : index
    %c0_55 = arith.constant 0 : index
    %85 = vector.load %arg7[%c0_54, %c0_55] : memref<128x8xf32, #tpu.memory_space<vmem>>, vector<128x8xf32>
    %86 = arith.truncf %85 : vector<128x8xf32> to vector<128x8xbf16>
    %c0_56 = arith.constant 0 : index
    %c0_57 = arith.constant 0 : index
    %87 = vector.load %arg4[%c0_56, %c0_57] : memref<128x8xbf16, #tpu.memory_space<vmem>>, vector<128x8xbf16>
    tpu.vector_store %arg4[%c0_56, %c0_57], %86 {strides = array<i32>} : memref<128x8xbf16, #tpu.memory_space<vmem>>, vector<128x8xbf16>,
    %cst_58 = arith.constant dense<0.000000e+00> : vector<8xf32>
    %88 = vector.multi_reduction <add>, %85, %cst_58 [0] : vector<128x8xf32> to vector<8xf32>
    %89 = vector.shape_cast %88 : vector<8xf32> to vector<1x8xf32>
    %90 = arith.mulf %85, %85 : vector<128x8xf32>
    %cst_59 = arith.constant dense<0.000000e+00> : vector<8xf32>
    %91 = vector.multi_reduction <add>, %90, %cst_59 [0] : vector<128x8xf32> to vector<8xf32>
    %92 = vector.shape_cast %91 : vector<8xf32> to vector<1x8xf32>
    %93 = vector.shape_cast %89 : vector<1x8xf32> to vector<1x8xf32>
    %94 = vector.broadcast %93 : vector<1x8xf32> to vector<8x8xf32>
    %c0_60 = arith.constant 0 : index
    %c0_61 = arith.constant 0 : index
    %c0_62 = arith.constant 0 : index
    %95 = vector.load %arg5[%c0_60, %c0_61, %c0_62] : memref<1x8x8xf32, #tpu.memory_space<vmem>>, vector<1x8x8xf32>
    %96 = vector.shape_cast %95 : vector<1x8x8xf32> to vector<8x8xf32>
    %97 = vector.shape_cast %94 : vector<8x8xf32> to vector<1x8x8xf32>
    tpu.vector_store %arg5[%c0_60, %c0_61, %c0_62], %97 {strides = array<i32>} : memref<1x8x8xf32, #tpu.memory_space<vmem>>, vector<1x8x8xf32>,
    %98 = vector.shape_cast %92 : vector<1x8xf32> to vector<1x8xf32>
    %99 = vector.broadcast %98 : vector<1x8xf32> to vector<8x8xf32>
    %c0_63 = arith.constant 0 : index
    %c0_64 = arith.constant 0 : index
    %c0_65 = arith.constant 0 : index
    %100 = vector.load %arg6[%c0_63, %c0_64, %c0_65] : memref<1x8x8xf32, #tpu.memory_space<vmem>>, vector<1x8x8xf32>
    %101 = vector.shape_cast %100 : vector<1x8x8xf32> to vector<8x8xf32>
    %102 = vector.shape_cast %99 : vector<8x8xf32> to vector<1x8x8xf32>
    tpu.vector_store %arg6[%c0_63, %c0_64, %c0_65], %102 {strides = array<i32>} : memref<1x8x8xf32, #tpu.memory_space<vmem>>, vector<1x8x8xf32>,
    return
  }
  func.func @transform_0(%arg0: i32, %arg1: i32) -> (i32, i32, i32, i32) {
    %c0_i32 = arith.constant 0 : i32
    %c0_i32_0 = arith.constant 0 : i32
    %c0_i32_1 = arith.constant 0 : i32
    %c0_i32_2 = arith.constant 0 : i32
    return %arg0, %c0_i32, %c0_i32_0, %c0_i32_1 : i32, i32, i32, i32
  }
  func.func @transform_1(%arg0: i32, %arg1: i32) -> (i32, i32, i32, i32) {
    %c0_i32 = arith.constant 0 : i32
    %c0_i32_0 = arith.constant 0 : i32
    %c0_i32_1 = arith.constant 0 : i32
    %c0_i32_2 = arith.constant 0 : i32
    %c0_i32_3 = arith.constant 0 : i32
    return %c0_i32, %c0_i32_0, %c0_i32_1, %c0_i32_2 : i32, i32, i32, i32
  }
  func.func @transform_2(%arg0: i32, %arg1: i32) -> (i32, i32) {
    %c2_i32 = arith.constant 2 : i32
    %0 = arith.muli %arg0, %c2_i32 : i32
    %1 = arith.addi %0, %arg1 : i32
    %c0_i32 = arith.constant 0 : i32
    %c0_i32_0 = arith.constant 0 : i32
    return %1, %c0_i32 : i32, i32
  }
  func.func @transform_3(%arg0: i32, %arg1: i32) -> (i32, i32, i32) {
    %c2_i32 = arith.constant 2 : i32
    %0 = arith.muli %arg0, %c2_i32 : i32
    %1 = arith.addi %0, %arg1 : i32
    %c0_i32 = arith.constant 0 : i32
    %c0_i32_0 = arith.constant 0 : i32
    %c0_i32_1 = arith.constant 0 : i32
    return %1, %c0_i32, %c0_i32_0 : i32, i32, i32
  }
  func.func @transform_4(%arg0: i32, %arg1: i32) -> (i32, i32, i32) {
    %c2_i32 = arith.constant 2 : i32
    %0 = arith.muli %arg0, %c2_i32 : i32
    %1 = arith.addi %0, %arg1 : i32
    %c0_i32 = arith.constant 0 : i32
    %c0_i32_0 = arith.constant 0 : i32
    %c0_i32_1 = arith.constant 0 : i32
    return %1, %c0_i32, %c0_i32_0 : i32, i32, i32
  }
}

</mosaic_0001>

<bundles_post_ra>
// kernel: tpu_custom_call.1
= control target key start
LH: loop header
LB: loop body
LE: loop exit
PB: predicated region body
PF: predicated region fallthrough
CT: control target
= control target key end

     0   :  { %10 = vsyncpa [#allocation4], 0  ;;  %s5387_s0 = inlined_call_operand.vmem [shape: bf16[2,18,18,4], index: 0, kind: input, shape index: {}]   ;;  %s5388_s1 = inlined_call_operand.vmem [shape: bf16[3,3,4,8], index: 1, kind: input, shape index: {}]   ;;  %s5389_s2 = inlined_call_operand.vmem [shape: bf16[512,8], index: 2, kind: output, shape index: {0}]   ;;  %s5390_s3 = inlined_call_operand.hbm [shape: f32[4,8,8], index: 3, kind: output, shape index: {1}]   ;;  %s5391_s4 = inlined_call_operand.hbm [shape: f32[4,8,8], index: 4, kind: output, shape index: {2}]  }
   0x1   :  { %12 = vsyncpa [#allocation4 + $0x1], 0 }
   0x2   :  { %13 = vsyncpa [#allocation6], 0 }
   0x3   :  { %15 = vsyncpa [#allocation6 + $0x1], 0  ;;  %s4078_s15 = smov 0   ;;  %s4080_s16 = smov 0  }
   0x4   :  { %s4082_s17 = smov 0   ;;  %s4084_s18 = smov 0  }
   0x5   :  { %s4086_s19 = smov 0   ;;  %s4088_s20 = smov 0  }
   0x6   :  { %s4090_s21 = smov 0   ;;  %s4092_s22 = smov 0  }
   0x7 LB: > { %s3286_s23 = sadd.s32 4294967295, %s4049_s22   ;;  %s30_s24 = sadd.s32 1, %s4041_s20  ;;  %s4049_s22 = sphi %s4092_s22, %s21_s22   ;;  %s4045_s21 = sphi %s4090_s21, %s5416_s21   ;;  %s4041_s20 = sphi %s4088_s20, %s5415_s20   ;;  %s4037_s19 = sphi %s4086_s19, %s5414_s19   ;;  %s4033_s18 = sphi %s4084_s18, %s5413_s18   ;;  %s4029_s17 = sphi %s4082_s17, %s5412_s17   ;;  %s4025_s16 = sphi %s4080_s16, %s5411_s16   ;;  %s4021_s15 = sphi %s4078_s15, %s5410_s15  }
   0x8   : > { %s33_s25 = sadd.s32 1, %s4045_s21  ;;  %p31_p0 = scmp.ge.s32.totalorder %s30_s24, 2 }
   0x9   : > { %s3290_s26 = sshll.u32 %s4045_s21, 1  ;;  %s3287_s27 = sadd.s32 4294967294, %s4049_s22  }
   0xa   : > { %s115_s28 = sadd.s32 %s4041_s20, %s3290_s26  ;;  %s5418_s24 = smov (%p31_p0, %s30_s24), 0 }
   0xb   : > { %s5420_s25 = smov (!%p31_p0, %s33_s25), %s4045_s21  ;;  %p131_p1 = scmp.ne.s32.totalorder %s4029_s17, %s4025_s16 }
   0xc   : > { %p132_p2 = scmp.eq.s32.totalorder %s3286_s23, 3  ;;  %p35_p3 = scmp.ge.s32.totalorder %s5420_s25, 2 }
   0xd   : > { %p137_p4 = scmp.ne.s32.totalorder %s4025_s16, %s4021_s15  ;;  %p138_p6 = scmp.eq.s32.totalorder %s3287_s27, 3 }
   0xe   : > { %p4131_p5 = por %p132_p2, %p131_p1  ;;  %s5422_s25 = smov (%p35_p3, %s5420_s25), 0 }
   0xf   : > { %p4137_p7 = por %p138_p6, %p137_p4  ;;  %p3296_p8 = scmp.ge.s32.totalorder %s4049_s22, 1 }
  0x10   : > { %s3291_s5 = sshll.u32 %s5422_s25, 1  ;;  %p197_p9 = scmp.lt.s32.totalorder %s4049_s22, 5 }
  0x11   : > { %s117_s6 = sadd.s32 %s3291_s5, %s5418_s24  ;;  %s121_s7 = sadd.s32 1, %s4029_s17 }
  0x12   : > { %s118_s8 = ssub.s32 %s115_s28, %s117_s6  ;;  %p198_p10 = pnand %p3296_p8, %p197_p9 }
  0x13   : > { %p119_p11 = scmp.eq.s32.totalorder %s118_s8, 0  ;;  %v256_v0 = vld [vmem:[%s5388_s1] sm:$0x3] (!%p198_p10)  ;;  %vm357_vm0 = vcmask (!%p198_p10), 1041408   ;;  %p235_p12 = scmp.lt.s32.totalorder (!%p198_p10), %s4037_s19, 1  ;;  %vm332_vm1 = vcmask (!%p198_p10), 31744  }
  0x14   : > { %201 = sbr.rel (%p198_p10) target bundleno = 480 (0x1e0), region = 28  ;;  %3813 = vmatprep.subr.msk.bf16.mxu1 (!%p198_p10), %vm357_vm0, %v256_v0  ;;  %v359_v1 = vsel (!%p198_p10), %vm357_vm0, %v256_v0, 0  ;;  %v257_v2 = vld [vmem:[%s5388_s1 + $0x2] sm:$0x3] (!%p198_p10)  ;;  %3812 = vmatprep.subr.msk.bf16.mxu0 (!%p198_p10), %vm357_vm0, %v256_v0  ;;  %v258_v3 = vld [vmem:[%s5388_s1 + $0x4] sm:$0x3] (!%p198_p10) }
  0x15   : > { %s4147_s9 = scalar_select %p119_p11, %s4029_s17, %s121_s7  }
  0x16   : > { %3811 = vmatpush3.bf16.msra.mxu1 (!%p198_p10), %v359_v1  ;;  %3649 = vmatpush3.bf16.msra.mxu0 (!%p198_p10), %v359_v1  ;;  %s3550_s27 = smul.u32 (!%p198_p10), 96, %s4033_s18  ;;  %v259_v4 = vld [vmem:[%s5388_s1 + $0x6] sm:$0x3] (!%p198_p10)  ;;  %v4172_v5 = vld [vmem:[%s5388_s1 + $0x8] sm:$0x3] (!%p198_p10)  ;;  %v719_v9 = vsel (!%p198_p10), %vm357_vm0, %v257_v2, 0 }
  0x17   : > { %3814 = vmatprep.subr.msk.bf16.mxu1 (!%p198_p10), %vm357_vm0, %v257_v2  ;;  %3815 = vmatprep.subr.msk.bf16.mxu0 (!%p198_p10), %vm357_vm0, %v258_v3  ;;  %v4177_v6 = vld [vmem:[%s5388_s1 + $0xa] sm:$0x3] (!%p198_p10)  ;;  %v4182_v7 = vld [vmem:[%s5388_s1 + $0xc] sm:$0x3] (!%p198_p10)  ;;  %v4187_v8 = vld [vmem:[%s5388_s1 + $0xe] sm:$0x3] (!%p198_p10) }
  0x18   : > { %v4194_v10 = vsel (!%p198_p10), %vm357_vm0, %v258_v3, 0  ;;  %v4197_v11 = vsel (!%p198_p10), %vm357_vm0, %v259_v4, 0  ;;  %v4201_v12 = vsel (!%p198_p10), %vm357_vm0, %v4172_v5, 0  ;;  %v4206_v13 = vld [vmem:[%s5388_s1 + $0x10] sm:$0x3] (!%p198_p10)  ;;  %v4212_v14 = vsel (!%p198_p10), %vm357_vm0, %v4177_v6, 0 }
  0x19   : > { %v4216_v15 = vsel (!%p198_p10), %vm357_vm0, %v4182_v7, 0  ;;  %v4220_v16 = vsel (!%p198_p10), %vm357_vm0, %v4187_v8, 0  ;;  %v4224_v17 = vsel (!%p198_p10), %vm357_vm0, %v4206_v13, 0  ;;  %vm475_vm2 = vsmask.f32 (!%p198_p10), 3328  ;;  %s5283_s23 = sand.u32 (!%p198_p10), 1, %s4025_s16  }
  0x1a   : > { %vm476_vm3 = vsmask.f32 (!%p198_p10), 7440  ;;  %vm874_vm4 = vcmask (!%p198_p10), 1042432   ;;  %vm875_vm5 = vcmask (!%p198_p10), 1046532   ;;  %vm458_vm8 = vcmask (!%p198_p10), 64512   ;;  %s3297_s28 = sshll.u32 (!%p198_p10), %s5283_s23, 3 }
  0x1b   : > { %s236_s26 = scalar_select %p235_p12, %s4037_s19, 1  ;;  %vm4349_vm6 = vmor %vm475_vm2, %vm476_vm3  ;;  %vm2985_vm9 = vcmask 60416  }
  0x1c   : > { %vm4360_vm7 = vmor %vm874_vm4, %vm875_vm5  ;;  %s4051_s13 = smov [#allocation3]  }
  0x1d   : > { %s3822_s8 = smul.u32 216, %s236_s26 }
  0x1f   : > { %s239_s26 = scalar_lea.vmem %s5387_s0, %s3822_s8 }
  0x20   : > { %s4208_s10 = scalar_lea.vmem %s239_s26, %s3550_s27  ;;  %s3300_s27 = sshll.u32 %s4037_s19, 1 }
  0x21   : > { %v4227_v18 = vld [vmem:[%s4208_s10 + $0x30] sm:$0xf]  ;;  %v4230_v19 = vld [vmem:[%s4208_s10 + $0x34] sm:$0xf]  ;;  %v4233_v20 = vld [vmem:[%s4208_s10 + $0x3c] sm:$0xf]  ;;  %s5164_s8 = sadd.s32 %s4033_s18, %s3300_s27 }
  0x22   : > { %v3310_v21 = vcombine.low %v4227_v18, %v4230_v19  ;;  %v575_v22 = vshrl.u32 %v4227_v18, 16  ;;  %v578_v23 = vshll.u32 %v4227_v18, 16  ;;  %v584_v24 = vshll.u32 %v4230_v19, 16  ;;  %v4241_v25 = vld [vmem:[%s4208_s10 + $0x40] sm:$0xf]  ;;  %s3301_s18 = sshll.u32 %s5164_s8, 4 }
  0x23   : > { %v588_v26 = vshrl.u32 %v4230_v19, 16  ;;  %v5392_v28 = vrot.slane %v4230_v19, 5  ;;  %v3311_v29 = vcombine.low %v4233_v20, %v4241_v25  ;;  %v4249_v30 = vld [vmem:[%s4208_s10] sm:$0xf]  ;;  %v599_v34 = vshrl.u32 %v4233_v20, 16  ;;  %p5176_p13 = scmp.lt.s32.totalorder %s3301_s18, 63 }
  0x24   : > { %3658 = vmatprep.mubr.msk.bf16.mxu1 %vm332_vm1, %v3310_v21  ;;  %v577_v31 = vrot.slane %v575_v22, 4  ;;  %v580_v32 = vrot.slane %v578_v23, 5  ;;  %v4252_v33 = vrot.slane %v584_v24, 5  ;;  %v4256_v35 = vld [vmem:[%s4208_s10 + $0x4] sm:$0xf]  ;;  %v602_v38 = vshll.u32 %v4233_v20, 16 }
  0x25   : > { %v590_v36 = vrot.slane %v588_v26, 4  ;;  %v4260_v37 = vrot.slane %v5392_v28, 4  ;;  %3659 = vmatmul.mubr.msk.bf16.vlgmr.msra.gmra.mrb[0].mxu1 %vm332_vm1, %v3311_v29  ;;  %v3306_v41 = vcombine.low %v4249_v30, %v4256_v35  ;;  %v479_v42 = vshrl.u32 %v4249_v30, 16  ;;  %v4270_v44 = vld [vmem:[%s4208_s10 + $0xc] sm:$0xf]  ;;  %s5424_s18 = smov (!%p5176_p13, %s3301_s18), 63 }
  0x26   : > { %v581_v40 = vor.u32 %v580_v32, %v577_v31  ;;  %3667 = vmatpush3.bf16.msra.mxu1 %v719_v9  ;;  %v482_v43 = vshll.u32 %v4249_v30, 16  ;;  %v4273_v45 = vld [vmem:[%s4208_s10 + $0x10] sm:$0xf]  ;;  %v488_v47 = vshll.u32 %v4256_v35, 16  ;;  %v492_v48 = vshrl.u32 %v4256_v35, 16  ;;  %s3302_s11 = sshll.u32 %s5424_s18, 2 }
  0x27   : > { %v591_v46 = vor.u32 %v590_v36, %v4252_v33  ;;  %v3338_v49 = vrot.slane %v4249_v30, 9  ;;  %3816 = vmatprep.subr.msk.bf16.mxu1 %vm357_vm0, %v259_v4  ;;  %3650 = vmatprep.mubr.msk.bf16.mxu0 %vm332_vm1, %v3306_v41  ;;  %v481_v51 = vrot.slane %v479_v42, 4  ;;  %v879_v53 = vrot.slane %v4256_v35, 5  ;;  %v4285_v54 = vld [vmem:[%s4208_s10 + $0x48] sm:$0xf]  ;;  %s5199_s14 = scalar_lea.vmem %s5389_s2, %s3302_s11  ;;  %s3545_s5 = sshll.u32 %s5164_s8, 7 }
  0x28   : > { %v4280_v50 = vrot.slane %v581_v40, 4  ;;  %v484_v52 = vrot.slane %v482_v43, 5  ;;  %v4289_v56 = vrot.slane %v488_v47, 5  ;;  %v494_v57 = vrot.slane %v492_v48, 4  ;;  %v4294_v59 = vld [vmem:[%s4208_s10 + $0x4c] sm:$0xf]  ;;  %s5294_s27 = scalar_lea.hbm %s5390_s3, %s3545_s5 }
  0x29   : > { %v4287_v55 = vrot.slane %v591_v46, 4  ;;  %v3307_v58 = vcombine.low %v4270_v44, %v4273_v45  ;;  %v4298_v61 = vrot.slane %v879_v53, 4  ;;  %v503_v62 = vshrl.u32 %v4270_v44, 16  ;;  %v4303_v0 = vld [vmem:[%s4208_s10 + $0x54] sm:$0xf]  ;;  %s227_s26 = scalar_lea.vmem [#allocation3], %s3297_s28 }
  0x2a   : > { %v485_v60 = vor.u32 %v484_v52, %v481_v51  ;;  %v506_v63 = vshll.u32 %v4270_v44, 16  ;;  %v495_v1 = vor.u32 %v494_v57, %v4289_v56  ;;  %v512_v2 = vshll.u32 %v4273_v45, 16  ;;  %v4311_v9 = vld [vmem:[%s4208_s10 + $0x58] sm:$0xf]  ;;  %v4323_v40 = vld [vmem:[%s4208_s10 + $0x1c] sm:$0xf] }
  0x2b   : > { %3651 = vmatmul.mubr.msk.bf16.vlgmr.msra.gmra.mrb[0].mxu0 %vm332_vm1, %v3307_v58  ;;  %v516_v3 = vshrl.u32 %v4273_v45, 16  ;;  %v3339_v4 = vrot.slane %v4270_v44, 9  ;;  %v505_v22 = vrot.slane %v503_v62, 4  ;;  %v886_v24 = vrot.slane %v4273_v45, 5  ;;  %v4318_v26 = vld [vmem:[%s4208_s10 + $0x18] sm:$0xf] }
  0x2c   : > { %v4313_v21 = vrot.slane %v485_v60, 4  ;;  %v508_v23 = vrot.slane %v506_v63, 5  ;;  %3685 = vmatpush3.bf16.msra.mxu0 %v4194_v10  ;;  %v496_v29 = vrot.slane %v495_v1, 4  ;;  %v514_v31 = vrot.slane %v512_v2, 5  ;;  %v4332_v44 = vld [vmem:[%s4208_s10 + $0x24] sm:$0xf] }
  0x2d   : > { %v518_v32 = vrot.slane %v516_v3, 4  ;;  %v3312_v36 = vcombine.low %v4285_v54, %v4294_v59  ;;  %3817 = vmatprep.subr.msk.bf16.mxu0 %vm357_vm0, %v4172_v5  ;;  %v4327_v42 = vrot.slane %v886_v24, 4  ;;  %v3313_v47 = vcombine.low %v4303_v0, %v4311_v9  ;;  %v4340_v48 = vld [vmem:[%s4208_s10 + $0x28] sm:$0xf]  ;;  %v273_v63 = vld [vmem:[%s4208_s10 + $0x14] sm:$0x1] }
  0x2e   : > { %v509_v41 = vor.u32 %v508_v23, %v505_v22  ;;  %v270_v51 = vld [vmem:[%s4208_s10 + $0x8] sm:$0x1]  ;;  %v3308_v60 = vcombine.low %v4318_v26, %v4323_v40  ;;  %v527_v2 = vshrl.u32 %v4318_v26, 16  ;;  %v530_v3 = vshll.u32 %v4318_v26, 16  ;;  %s3128_s6 = sshll.u32 %s227_s26, 4  ;;  %s5299_s18 = scalar_lea.vmem [#allocation5], %s3297_s28  ;;  %s5296_s6 = int_to_ptr.vmem [resolvable:$true] %s3128_s6 }
  0x2f   : > { %v519_v45 = vor.u32 %v518_v32, %v514_v31  ;;  %3662 = vmatprep.mubr.msk.bf16.mxu1 %vm332_vm1, %v3312_v36  ;;  %v540_v22 = vshrl.u32 %v4323_v40, 16  ;;  %v3309_v32 = vcombine.low %v4332_v44, %v4340_v48  ;;  %v551_v36 = vshrl.u32 %v4332_v44, 16  ;;  %s3102_s11 = scalar_lea.sflag [#allocation4], %s5283_s23  ;;  %s3923_s12 = scalar_lea.vmem %s5296_s6, 128 }
  0x30   : > { %v510_v52 = vrot.slane %v509_v41, 4  ;;  %3663 = vmatmul.mubr.msk.bf16.gmra.mrb[4].mxu1 %vm332_vm1, %v3313_v47  ;;  %3654 = vmatprep.mubr.msk.bf16.mxu0 %vm332_vm1, %v3308_v60  ;;  %v554_v41 = vshll.u32 %v4332_v44, 16  ;;  %v491_v47 = vsel %vm4349_vm6, %v4313_v21, %v4289_v56  ;;  %v498_v58 = vshll.u32 %v270_v51, 16  ;;  %v4377_v60 = vld [vmem:[%s4208_s10 + $0x20] sm:$0x1]  ;;  %p3924_p0 = scmp.ne.s32.totalorder %s5296_s6, %s3923_s12 }
  0x31   : > { %v520_v1 = vrot.slane %v519_v45, 4  ;;  %v564_v45 = vshrl.u32 %v4340_v48, 16  ;;  %v522_v5 = vshll.u32 %v273_v63, 16  ;;  %v880_v46 = vsel %vm4360_vm7, %v3338_v49, %v879_v53 }
  0x32   : > { %v515_v57 = vsel %vm4349_vm6, %v510_v52, %v514_v31  ;;  %v882_v43 = vrot.slane %v270_v51, 5  ;;  %v529_v10 = vrot.slane %v527_v2, 4  ;;  %v532_v56 = vrot.slane %v530_v3, 5  ;;  %p3925_p1 = pnand %p3924_p0, %p4131_p5 }
  0x33   : > { %3655 = vmatmul.mubr.msk.bf16.gmra.mrb[4].mxu0 %vm332_vm1, %v3309_v32  ;;  %v500_v21 = vrot.slane %v498_v58, 5  ;;  %v524_v27 = vrot.slane %v522_v5, 5  ;;  %v536_v31 = vshll.u32 %v4323_v40, 16  ;;  %v542_v52 = vrot.slane %v540_v22, 4  ;;  %v279_v58 = vld [vmem:[%s4208_s10 + $0x2c] sm:$0x1] }
  0x34   : > { %v883_v32 = vsel %vm4360_vm7, %v4298_v61, %v882_v43  ;;  %v533_v28 = vor.u32 %v532_v56, %v529_v10  ;;  %v546_v35 = vshll.u32 %v4377_v60, 16  ;;  %v887_v30 = vsel %vm4360_vm7, %v3339_v4, %v886_v24  ;;  %p3926_p2 = pneg %p3925_p1 }
  0x35   : > { %v501_v49 = vsel %vm4349_vm6, %v496_v29, %v500_v21  ;;  %v525_v53 = vsel %vm4349_vm6, %v520_v1, %v524_v27  ;;  %v3346_v5 = vcombine.low %v880_v46, %v883_v32  ;;  %v538_v51 = vrot.slane %v536_v31, 5  ;;  %v282_v21 = vld [vmem:[%s4208_s10 + $0x38] sm:$0x1] }
  0x36   : > { %v3322_v2 = vcombine.low %v491_v47, %v501_v49  ;;  %v3323_v3 = vcombine.low %v515_v57, %v525_v53  ;;  %v534_v22 = vrot.slane %v533_v28, 4  ;;  %v548_v39 = vrot.slane %v546_v35, 5  ;;  %v285_v49 = vld [vmem:[%s4208_s10 + $0x44] sm:$0x1] }
  0x37   : > { %3686 = vmatprep.mubr.msk.bf16.mxu0 %vm332_vm1, %v3346_v5  ;;  %v543_v61 = vor.u32 %v542_v52, %v538_v51  ;;  %v889_v10 = vrot.slane %v273_v63, 5  ;;  %v553_v43 = vrot.slane %v551_v36, 4  ;;  %v556_v56 = vrot.slane %v554_v41, 5 }
  0x38   : > { %3668 = vmatprep.mubr.msk.bf16.mxu1 %vm332_vm1, %v3322_v2  ;;  %v539_v4 = vsel %vm4349_vm6, %v534_v22, %v538_v51  ;;  %v560_v27 = vshll.u32 %v4340_v48, 16  ;;  %v566_v24 = vrot.slane %v564_v45, 4  ;;  %v570_v29 = vshll.u32 %v279_v58, 16 }
  0x39   : > { %3669 = vmatmul.mubr.msk.bf16.vlgmr.msra.gmra.mrb[8].mxu1 %vm332_vm1, %v3323_v3  ;;  %v544_v28 = vrot.slane %v543_v61, 4  ;;  %v890_v46 = vsel %vm4360_vm7, %v4327_v42, %v889_v10  ;;  %v557_v57 = vor.u32 %v556_v56, %v553_v43  ;;  %v3340_v63 = vrot.slane %v4318_v26, 9 }
  0x3a   : > { %3703 = vmatpush3.bf16.msra.mxu1 %v4197_v11  ;;  %v3347_v1 = vcombine.low %v887_v30, %v890_v46  ;;  %v562_v36 = vrot.slane %v560_v27, 5  ;;  %v572_v41 = vrot.slane %v570_v29, 5  ;;  %v893_v47 = vrot.slane %v4323_v40, 5  ;;  %v4452_v27 = vld [vmem:[%s4208_s10 + $0x50] sm:$0x1] }
  0x3b   : > { %v549_v45 = vsel %vm4349_vm6, %v544_v28, %v548_v39  ;;  %v558_v31 = vrot.slane %v557_v57, 4  ;;  %v896_v52 = vrot.slane %v4377_v60, 5  ;;  %v587_v42 = vsel %vm4349_vm6, %v4280_v50, %v4252_v33  ;;  %3818 = vmatprep.subr.msk.bf16.mxu1 %vm357_vm0, %v4177_v6 }
  0x3c   : > { %v3324_v11 = vcombine.low %v539_v4, %v549_v45  ;;  %3687 = vmatmul.mubr.msk.bf16.vlgmr.msra.gmra.mrb[8].mxu0 %vm332_vm1, %v3347_v1  ;;  %v567_v26 = vor.u32 %v566_v24, %v562_v36  ;;  %v894_v40 = vsel %vm4360_vm7, %v3340_v63, %v893_v47  ;;  %v895_v39 = vrot.slane %v893_v47, 4 }
  0x3d   : > { %v563_v60 = vsel %vm4349_vm6, %v558_v31, %v562_v36  ;;  %3721 = vmatpush3.bf16.msra.mxu0 %v4201_v12  ;;  %v594_v32 = vshll.u32 %v282_v21, 16  ;;  %v3341_v33 = vrot.slane %v4332_v44, 9  ;;  %v900_v50 = vrot.slane %v4340_v48, 5 }
  0x3e   : > { %3672 = vmatprep.mubr.msk.bf16.mxu1 %vm332_vm1, %v3324_v11  ;;  %v568_v6 = vrot.slane %v567_v26, 4  ;;  %v897_v35 = vsel %vm4360_vm7, %v895_v39, %v896_v52  ;;  %v903_v30 = vrot.slane %v279_v58, 5  ;;  %v601_v53 = vrot.slane %v599_v34, 4  ;;  %3819 = vmatprep.subr.msk.bf16.mxu0 %vm357_vm0, %v4182_v7 }
  0x3f   : > { %v3348_v12 = vcombine.low %v894_v40, %v897_v35  ;;  %v596_v5 = vrot.slane %v594_v32, 5  ;;  %v901_v44 = vsel %vm4360_vm7, %v3341_v33, %v900_v50  ;;  %v902_v48 = vrot.slane %v900_v50, 4 }
  0x40   : > { %v573_v51 = vsel %vm4349_vm6, %v568_v6, %v572_v41  ;;  %v604_v58 = vrot.slane %v602_v38, 5  ;;  %v608_v2 = vshll.u32 %v4241_v25, 16  ;;  %v5399_v34 = vshrl.u32 %v4241_v25, 16  ;;  %v291_v6 = vld [vmem:[%s4208_s10 + $0x5c] sm:$0x1] }
  0x41   : > { %v3325_v22 = vcombine.low %v563_v60, %v573_v51  ;;  %3690 = vmatprep.mubr.msk.bf16.mxu0 %vm332_vm1, %v3348_v12  ;;  %v597_v7 = vsel %vm4349_vm6, %v4287_v55, %v596_v5  ;;  %v904_v61 = vsel %vm4360_vm7, %v902_v48, %v903_v30  ;;  %v618_v10 = vshll.u32 %v285_v49, 16 }
  0x42   : > { %v614_v3 = vrot.slane %v5399_v34, 4  ;;  %v3326_v43 = vcombine.low %v587_v42, %v597_v7  ;;  %v3349_v56 = vcombine.low %v901_v44, %v904_v61  ;;  %v605_v4 = vor.u32 %v604_v58, %v601_v53 }
  0x43   : > { %v610_v38 = vrot.slane %v608_v2, 5  ;;  %3673 = vmatmul.mubr.msk.bf16.gmra.mrb[12].mxu1 %vm332_vm1, %v3325_v22  ;;  %v620_v24 = vrot.slane %v618_v10, 5  ;;  %v5400_v29 = vrot.slane %v4230_v19, 5  ;;  %v5401_v28 = vrot.slane %v4227_v18, 9 }
  0x44   : > { %v910_v46 = vrot.slane %v282_v21, 5  ;;  %v5402_v57 = vshrl.u32 %v4285_v54, 16  ;;  %3676 = vmatprep.mubr.msk.bf16.mxu1 %vm332_vm1, %v3326_v43  ;;  %3691 = vmatmul.mubr.msk.bf16.gmra.mrb[12].mxu0 %vm332_vm1, %v3349_v56  ;;  %v606_v1 = vrot.slane %v605_v4, 4  ;;  %v5403_v41 = vshll.u32 %v4285_v54, 16  ;;  %v4499_v4 = vld [vmem:[%s4208_s10 + $0xc] sm:$0xf] }
  0x45   : > { %v908_v55 = vsel %vm4360_vm7, %v5401_v28, %v5400_v29  ;;  %v615_v36 = vor.u32 %v614_v3, %v610_v38  ;;  %v632_v19 = vshll.u32 %v4294_v59, 16  ;;  %v5404_v21 = vshrl.u32 %v4294_v59, 16 }
  0x46   : > { %v625_v63 = vrot.slane %v5402_v57, 4  ;;  %v628_v47 = vrot.slane %v5403_v41, 5  ;;  %v911_v18 = vsel %vm4360_vm7, %v4260_v37, %v910_v46  ;;  %v642_v31 = vshll.u32 %v4452_v27, 16 }
  0x47   : > { %v638_v45 = vrot.slane %v5404_v21, 4  ;;  %v3343_v52 = vrot.slane %v4233_v20, 9  ;;  %v611_v42 = vsel %vm4349_vm6, %v606_v1, %v610_v38  ;;  %v616_v11 = vrot.slane %v615_v36, 4  ;;  %v4524_v21 = vld [vmem:[%s4208_s10 + $0x1c] sm:$0xf] }
  0x48   : > { %v3350_v26 = vcombine.low %v908_v55, %v911_v18  ;;  %v629_v40 = vor.u32 %v628_v47, %v625_v63  ;;  %v634_v39 = vrot.slane %v632_v19, 5  ;;  %v644_v60 = vrot.slane %v642_v31, 5  ;;  %v4506_v55 = vld [vmem:[%s4208_s10 + $0x10] sm:$0xf] }
  0x49   : > { %v914_v32 = vrot.slane %v4241_v25, 5  ;;  %v917_v33 = vrot.slane %v285_v49, 5  ;;  %v621_v37 = vsel %vm4349_vm6, %v616_v11, %v620_v24  ;;  %v5405_v20 = vshrl.u32 %v4303_v0, 16 }
  0x4a   : > { %3694 = vmatprep.mubr.msk.bf16.mxu0 %vm332_vm1, %v3350_v26  ;;  %v630_v50 = vrot.slane %v629_v40, 4  ;;  %v5406_v30 = vshll.u32 %v4303_v0, 16  ;;  %v3327_v12 = vcombine.low %v611_v42, %v621_v37  ;;  %v639_v5 = vor.u32 %v638_v45, %v634_v39 }
  0x4b   : > { %v649_v35 = vrot.slane %v5405_v20, 4  ;;  %v915_v25 = vsel %vm4360_vm7, %v3343_v52, %v914_v32  ;;  %v916_v49 = vrot.slane %v914_v32, 4  ;;  %v656_v51 = vshll.u32 %v4311_v9, 16 }
  0x4c   : > { %v652_v53 = vrot.slane %v5406_v30, 5  ;;  %v635_v44 = vsel %vm4349_vm6, %v630_v50, %v634_v39  ;;  %v5407_v58 = vshrl.u32 %v4311_v9, 16  ;;  %3677 = vmatmul.mubr.msk.bf16.gmra.mrb[16].mxu1 %vm332_vm1, %v3327_v12  ;;  %v640_v34 = vrot.slane %v639_v5, 4  ;;  %v4537_v39 = vld [vmem:[%s4208_s10 + $0x14] sm:$0x1] }
  0x4d   : > { %v918_v3 = vsel %vm4360_vm7, %v916_v49, %v917_v33  ;;  %v666_v22 = vshll.u32 %v291_v6, 16  ;;  %v3344_v7 = vrot.slane %v4285_v54, 9  ;;  %v658_v43 = vrot.slane %v656_v51, 5 }
  0x4e   : > { %v653_v48 = vor.u32 %v652_v53, %v649_v35  ;;  %v662_v2 = vrot.slane %v5407_v58, 4  ;;  %v3351_v61 = vcombine.low %v915_v25, %v918_v3  ;;  %v921_v56 = vrot.slane %v4294_v59, 5 }
  0x4f   : > { %v645_v38 = vsel %vm4349_vm6, %v640_v34, %v644_v60  ;;  %v668_v24 = vrot.slane %v666_v22, 5  ;;  %v924_v29 = vrot.slane %v4452_v27, 5  ;;  %v3345_v28 = vrot.slane %v4303_v0, 9  ;;  %v4517_v27 = vld [vmem:[%s4208_s10 + $0x18] sm:$0xf] }
  0x50   : > { %v654_v10 = vrot.slane %v653_v48, 4  ;;  %v3328_v54 = vcombine.low %v635_v44, %v645_v38  ;;  %3695 = vmatmul.mubr.msk.bf16.gmra.mrb[16].mxu0 %vm332_vm1, %v3351_v61  ;;  %v663_v46 = vor.u32 %v662_v2, %v658_v43  ;;  %v922_v57 = vsel %vm4360_vm7, %v3344_v7, %v921_v56  ;;  %v4540_v60 = vld [vmem:[%s4208_s10 + $0x24] sm:$0xf]  ;;  %v4557_v44 = vld [vmem:[%s4208_s10 + $0x20] sm:$0x1] }
  0x51   : > { %v923_v63 = vrot.slane %v921_v56, 4  ;;  %v928_v1 = vrot.slane %v4311_v9, 5  ;;  %v931_v36 = vrot.slane %v291_v6, 5  ;;  %v3388_v0 = vcombine.low %v4499_v4, %v4506_v55  ;;  %v4546_v6 = vld [vmem:[%s4208_s10 + $0x28] sm:$0xf] }
  0x52   : > { %v659_v59 = vsel %vm4349_vm6, %v654_v10, %v658_v43  ;;  %3680 = vmatprep.mubr.msk.bf16.mxu1 %vm332_vm1, %v3328_v54  ;;  %v664_v41 = vrot.slane %v663_v46, 4  ;;  %v1370_v47 = vshrl.u32 %v4499_v4, 16  ;;  %v1373_v19 = vshll.u32 %v4499_v4, 16  ;;  %v4563_v34 = vld [vmem:[%s4208_s10 + $0x30] sm:$0xf] }
  0x53   : > { %v1383_v18 = vshrl.u32 %v4506_v55, 16  ;;  %v925_v9 = vsel %vm4360_vm7, %v923_v63, %v924_v29  ;;  %v929_v45 = vsel %vm4360_vm7, %v3345_v28, %v928_v1  ;;  %v930_v31 = vrot.slane %v928_v1, 4  ;;  %v4567_v10 = vld [vmem:[%s4208_s10 + $0x34] sm:$0xf]  ;;  %v4575_v46 = vld [vmem:[%s4208_s10 + $0x2c] sm:$0x1] }
  0x54   : > { %v3389_v52 = vcombine.low %v4517_v27, %v4524_v21  ;;  %v669_v42 = vsel %vm4349_vm6, %v664_v41, %v668_v24  ;;  %v3352_v11 = vcombine.low %v922_v57, %v925_v9  ;;  %v1394_v26 = vshrl.u32 %v4517_v27, 16 }
  0x55   : > { %v1397_v40 = vshll.u32 %v4517_v27, 16  ;;  %v3329_v32 = vcombine.low %v659_v59, %v669_v42  ;;  %v932_v33 = vsel %vm4360_vm7, %v930_v31, %v931_v36  ;;  %v1407_v37 = vshrl.u32 %v4524_v21, 16 }
  0x56   : > { %v1372_v50 = vrot.slane %v1370_v47, 4  ;;  %3698 = vmatprep.mubr.msk.bf16.mxu0 %vm332_vm1, %v3352_v11  ;;  %v3353_v20 = vcombine.low %v929_v45, %v932_v33  ;;  %v1375_v35 = vrot.slane %v1373_v19, 5  ;;  %v1379_v30 = vshll.u32 %v4506_v55, 16  ;;  %v4588_v11 = vld [vmem:[%s4208_s10 + $0x40] sm:$0xf] }
  0x57   : > { %v1385_v53 = vrot.slane %v1383_v18, 4  ;;  %3681 = vmatmul.mubr.msk.bf16.gmra.mrb[20].mxu1 %vm332_vm1, %v3329_v32  ;;  %v1389_v12 = vshll.u32 %v4537_v39, 16  ;;  %v3390_v5 = vcombine.low %v4540_v60, %v4546_v6  ;;  %v1418_v25 = vshrl.u32 %v4540_v60, 16  ;;  %v4581_v18 = vld [vmem:[%s4208_s10 + $0x3c] sm:$0xf] }
  0x58   : > { %v1421_v49 = vshll.u32 %v4540_v60, 16  ;;  %3699 = vmatmul.mubr.msk.bf16.gmra.mrb[20].mxu0 %vm332_vm1, %v3353_v20  ;;  %3704 = vmatprep.mubr.msk.bf16.mxu1 %vm332_vm1, %v3388_v0  ;;  %v1376_v48 = vor.u32 %v1375_v35, %v1372_v50  ;;  %v1381_v51 = vrot.slane %v1379_v30, 5  ;;  %v1431_v58 = vshrl.u32 %v4546_v6, 16 }
  0x59   : > { %v1396_v2 = vrot.slane %v1394_v26, 4  ;;  %v1391_v3 = vrot.slane %v1389_v12, 5  ;;  %v1399_v22 = vrot.slane %v1397_v40, 5  ;;  %v1403_v7 = vshll.u32 %v4524_v21, 16 }
  0x5a   : > { %v1409_v61 = vrot.slane %v1407_v37, 4  ;;  %v1377_v43 = vrot.slane %v1376_v48, 4  ;;  %v1386_v56 = vor.u32 %v1385_v53, %v1381_v51  ;;  %v1413_v38 = vshll.u32 %v4557_v44, 16 }
  0x5b   : > { %v3391_v24 = vcombine.low %v4563_v34, %v4567_v10  ;;  %v1400_v29 = vor.u32 %v1399_v22, %v1396_v2  ;;  %v1405_v28 = vrot.slane %v1403_v7, 5  ;;  %v1442_v54 = vshrl.u32 %v4563_v34, 16 }
  0x5c   : > { %v1445_v59 = vshll.u32 %v4563_v34, 16  ;;  %v1382_v57 = vsel %vm4349_vm6, %v1377_v43, %v1381_v51  ;;  %v1387_v63 = vrot.slane %v1386_v56, 4  ;;  %v1415_v1 = vrot.slane %v1413_v38, 5 }
  0x5d   : > { %v1455_v36 = vshrl.u32 %v4567_v10, 16  ;;  %v1401_v0 = vrot.slane %v1400_v29, 4  ;;  %v1410_v41 = vor.u32 %v1409_v61, %v1405_v28  ;;  %v1420_v47 = vrot.slane %v1418_v25, 4 }
  0x5e   : > { %v1423_v19 = vrot.slane %v1421_v49, 5  ;;  %v1392_v9 = vsel %vm4349_vm6, %v1387_v63, %v1391_v3  ;;  %v1427_v45 = vshll.u32 %v4546_v6, 16  ;;  %v1433_v31 = vrot.slane %v1431_v58, 4  ;;  %v4612_v58 = vld [vmem:[%s4208_s10 + $0x4c] sm:$0xf] }
  0x5f   : > { %v1437_v42 = vshll.u32 %v4575_v46, 16  ;;  %3705 = vmatmul.mubr.msk.bf16.vlgmr.msra.gmra.mrb[24].mxu1 %vm332_vm1, %v3389_v52  ;;  %v3404_v26 = vcombine.low %v1382_v57, %v1392_v9  ;;  %v1406_v40 = vsel %vm4349_vm6, %v1401_v0, %v1405_v28  ;;  %v1411_v32 = vrot.slane %v1410_v41, 4  ;;  %v4599_v52 = vld [vmem:[%s4208_s10 + $0x38] sm:$0x1]  ;;  %v4631_v0 = vld [vmem:[%s4208_s10 + $0x54] sm:$0xf] }
  0x60   : > { %v1424_v33 = vor.u32 %v1423_v19, %v1420_v47  ;;  %3739 = vmatpush3.bf16.msra.mxu1 %v4212_v14  ;;  %3708 = vmatprep.mubr.msk.bf16.mxu1 %vm332_vm1, %v3390_v5  ;;  %v1429_v37 = vrot.slane %v1427_v45, 5  ;;  %v3392_v20 = vcombine.low %v4581_v18, %v4588_v11  ;;  %v1466_v35 = vshrl.u32 %v4581_v18, 16  ;;  %v4607_v5 = vld [vmem:[%s4208_s10 + $0x48] sm:$0xf]  ;;  %v4641_v9 = vld [vmem:[%s4208_s10 + $0x58] sm:$0xf] }
  0x61   : > { %v1439_v50 = vrot.slane %v1437_v42, 5  ;;  %3722 = vmatprep.mubr.msk.bf16.mxu0 %vm332_vm1, %v3404_v26  ;;  %v1416_v30 = vsel %vm4349_vm6, %v1411_v32, %v1415_v1  ;;  %v1469_v14 = vshll.u32 %v4581_v18, 16  ;;  %v1479_v12 = vshrl.u32 %v4588_v11, 16  ;;  %3820 = vmatprep.subr.msk.bf16.mxu1 %vm357_vm0, %v4187_v8 }
  0x62   : > { %v1425_v53 = vrot.slane %v1424_v33, 4  ;;  %v3405_v25 = vcombine.low %v1406_v40, %v1416_v30  ;;  %v1434_v49 = vor.u32 %v1433_v31, %v1429_v37  ;;  %v1444_v48 = vrot.slane %v1442_v54, 4  ;;  %v4653_v33 = vld [vmem:[%s4208_s10 + $0x50] sm:$0x1] }
  0x63   : > { %v1447_v51 = vrot.slane %v1445_v59, 5  ;;  %v1451_v3 = vshll.u32 %v4567_v10, 16  ;;  %v1457_v22 = vrot.slane %v1455_v36, 4  ;;  %v1461_v7 = vshll.u32 %v4599_v52, 16  ;;  %v4626_v59 = vld [vmem:[%s4208_s10 + $0x44] sm:$0x1] }
  0x64   : > { %v1430_v2 = vsel %vm4349_vm6, %v1425_v53, %v1429_v37  ;;  %3723 = vmatmul.mubr.msk.bf16.vlgmr.msra.gmra.mrb[24].mxu0 %vm332_vm1, %v3405_v25  ;;  %v1435_v61 = vrot.slane %v1434_v49, 4  ;;  %v3393_v43 = vcombine.low %v4607_v5, %v4612_v58  ;;  %v1490_v56 = vshrl.u32 %v4607_v5, 16  ;;  %v4660_v25 = vld [vmem:[%s4208_s10 + $0x60] sm:$0xf]  ;;  %v4663_v49 = vld [vmem:[%s4208_s10 + $0x64] sm:$0xf] }
  0x65   : > { %v1448_v8 = vor.u32 %v1447_v51, %v1444_v48  ;;  %3757 = vmatpush3.bf16.msra.mxu0 %v4216_v15  ;;  %v1453_v38 = vrot.slane %v1451_v3, 5  ;;  %v1463_v29 = vrot.slane %v1461_v7, 5  ;;  %v1493_v28 = vshll.u32 %v4607_v5, 16 }
  0x66   : > { %v1503_v54 = vshrl.u32 %v4612_v58, 16  ;;  %v1440_v57 = vsel %vm4349_vm6, %v1435_v61, %v1439_v50  ;;  %v1468_v1 = vrot.slane %v1466_v35, 4  ;;  %v1471_v36 = vrot.slane %v1469_v14, 5  ;;  %3821 = vmatprep.subr.msk.bf16.mxu0 %vm357_vm0, %v4206_v13 }
  0x67   : > { %v1449_v63 = vrot.slane %v1448_v8, 4  ;;  %3709 = vmatmul.mubr.msk.bf16.gmra.mrb[28].mxu1 %vm332_vm1, %v3391_v24  ;;  %v3406_v15 = vcombine.low %v1430_v2, %v1440_v57  ;;  %v1458_v41 = vor.u32 %v1457_v22, %v1453_v38  ;;  %v1475_v47 = vshll.u32 %v4588_v11, 16  ;;  %v4675_v57 = vld [vmem:[%s4208_s10 + $0x5c] sm:$0x1] }
  0x68   : > { %v1481_v19 = vrot.slane %v1479_v12, 4  ;;  %3712 = vmatprep.mubr.msk.bf16.mxu1 %vm332_vm1, %v3392_v20  ;;  %v1472_v31 = vor.u32 %v1471_v36, %v1468_v1  ;;  %v1485_v13 = vshll.u32 %v4626_v59, 16  ;;  %v3394_v24 = vcombine.low %v4631_v0, %v4641_v9 }
  0x69   : > { %v1454_v45 = vsel %vm4349_vm6, %v1449_v63, %v1453_v38  ;;  %3726 = vmatprep.mubr.msk.bf16.mxu0 %vm332_vm1, %v3406_v15  ;;  %v1459_v42 = vrot.slane %v1458_v41, 4  ;;  %v1477_v26 = vrot.slane %v1475_v47, 5  ;;  %v1514_v40 = vshrl.u32 %v4631_v0, 16 }
  0x6a   : > { %v1517_v32 = vshll.u32 %v4631_v0, 16  ;;  %v1473_v37 = vrot.slane %v1472_v31, 4  ;;  %v1487_v50 = vrot.slane %v1485_v13, 5  ;;  %v1527_v20 = vshrl.u32 %v4641_v9, 16 }
  0x6b   : > { %v1492_v35 = vrot.slane %v1490_v56, 4  ;;  %v1464_v30 = vsel %vm4349_vm6, %v1459_v42, %v1463_v29  ;;  %v1482_v53 = vor.u32 %v1481_v19, %v1477_v26  ;;  %v1495_v14 = vrot.slane %v1493_v28, 5 }
  0x6c   : > { %v1499_v12 = vshll.u32 %v4612_v58, 16  ;;  %v3407_v48 = vcombine.low %v1454_v45, %v1464_v30  ;;  %v1478_v51 = vsel %vm4349_vm6, %v1473_v37, %v1477_v26  ;;  %v1505_v2 = vrot.slane %v1503_v54, 4  ;;  %v4683_v45 = vld [vmem:[%s4208_s10 + $0x68] sm:$0x1] }
  0x6d   : > { %v1509_v3 = vshll.u32 %v4653_v33, 16  ;;  %v1483_v22 = vrot.slane %v1482_v53, 4  ;;  %v1496_v7 = vor.u32 %v1495_v14, %v1492_v35  ;;  %v3395_v8 = vcombine.low %v4660_v25, %v4663_v49 }
  0x6e   : > { %v1501_v61 = vrot.slane %v1499_v12, 5  ;;  %3727 = vmatmul.mubr.msk.bf16.gmra.mrb[28].mxu0 %vm332_vm1, %v3407_v48  ;;  %v1538_v38 = vshrl.u32 %v4660_v25, 16  ;;  %v1541_v29 = vshll.u32 %v4660_v25, 16  ;;  %v1551_v28 = vshrl.u32 %v4663_v49, 16 }
  0x6f   : > { %v1511_v56 = vrot.slane %v1509_v3, 5  ;;  %3713 = vmatmul.mubr.msk.bf16.gmra.mrb[32].mxu1 %vm332_vm1, %v3393_v43  ;;  %v1488_v54 = vsel %vm4349_vm6, %v1483_v22, %v1487_v50  ;;  %v1497_v63 = vrot.slane %v1496_v7, 4  ;;  %v1516_v36 = vrot.slane %v1514_v40, 4  ;;  %v4696_v22 = vld [vmem:[%s4208_s10 + $0x18] sm:$0xf] }
  0x70   : > { %v1506_v1 = vor.u32 %v1505_v2, %v1501_v61  ;;  %v3408_v15 = vcombine.low %v1478_v51, %v1488_v54  ;;  %3716 = vmatprep.mubr.msk.bf16.mxu1 %vm332_vm1, %v3394_v24  ;;  %v1519_v41 = vrot.slane %v1517_v32, 5  ;;  %v1523_v47 = vshll.u32 %v4641_v9, 16 }
  0x71   : > { %v1529_v19 = vrot.slane %v1527_v20, 4  ;;  %v1502_v31 = vsel %vm4349_vm6, %v1497_v63, %v1501_v61  ;;  %v1533_v43 = vshll.u32 %v4675_v57, 16  ;;  %v1540_v42 = vrot.slane %v1538_v38, 4 }
  0x72   : > { %v1507_v13 = vrot.slane %v1506_v1, 4  ;;  %3730 = vmatprep.mubr.msk.bf16.mxu0 %vm332_vm1, %v3408_v15  ;;  %v1520_v26 = vor.u32 %v1519_v41, %v1516_v36  ;;  %v1525_v40 = vrot.slane %v1523_v47, 5  ;;  %v1543_v37 = vrot.slane %v1541_v29, 5  ;;  %v4703_v29 = vld [vmem:[%s4208_s10 + $0x1c] sm:$0xf] }
  0x73   : > { %v1547_v24 = vshll.u32 %v4663_v49, 16  ;;  %v1535_v50 = vrot.slane %v1533_v43, 5  ;;  %v1553_v20 = vrot.slane %v1551_v28, 4  ;;  %v1557_v35 = vshll.u32 %v4683_v45, 16 }
  0x74   : > { %v1512_v32 = vsel %vm4349_vm6, %v1507_v13, %v1511_v56  ;;  %v1521_v53 = vrot.slane %v1520_v26, 4  ;;  %v1530_v14 = vor.u32 %v1529_v19, %v1525_v40  ;;  %v1544_v12 = vor.u32 %v1543_v37, %v1540_v42 }
  0x75   : > { %v3409_v30 = vcombine.low %v1502_v31, %v1512_v32  ;;  %v1549_v48 = vrot.slane %v1547_v24, 5  ;;  %v1559_v51 = vrot.slane %v1557_v35, 5  ;;  %v3420_v2 = vrot.slane %v4499_v4, 9  ;;  %v4743_v35 = vld [vmem:[%s4208_s10 + $0x34] sm:$0xf] }
  0x76   : > { %v1767_v3 = vrot.slane %v4506_v55, 5  ;;  %v1526_v7 = vsel %vm4349_vm6, %v1521_v53, %v1525_v40  ;;  %v1531_v61 = vrot.slane %v1530_v14, 4  ;;  %v1545_v56 = vrot.slane %v1544_v12, 4 }
  0x77   : > { %3731 = vmatmul.mubr.msk.bf16.gmra.mrb[32].mxu0 %vm332_vm1, %v3409_v30  ;;  %v1770_v38 = vrot.slane %v4537_v39, 5  ;;  %3717 = vmatmul.mubr.msk.bf16.gmra.mrb[36].mxu1 %vm332_vm1, %v3395_v8  ;;  %v1554_v28 = vor.u32 %v1553_v20, %v1549_v48  ;;  %v3421_v54 = vrot.slane %v4517_v27, 9  ;;  %v1774_v39 = vrot.slane %v4524_v21, 5  ;;  %v4723_v21 = vld [vmem:[%s4208_s10 + $0x24] sm:$0xf] }
  0x78   : > { %v1768_v4 = vsel %vm4360_vm7, %v3420_v2, %v1767_v3  ;;  %v1769_v55 = vrot.slane %v1767_v3, 4  ;;  %v1536_v63 = vsel %vm4349_vm6, %v1531_v61, %v1535_v50  ;;  %v1550_v1 = vsel %vm4349_vm6, %v1545_v56, %v1549_v48  ;;  %v4740_v20 = vld [vmem:[%s4208_s10 + $0x30] sm:$0xf]  ;;  %v4765_v56 = vld [vmem:[%s4208_s10 + $0x40] sm:$0xf] }
  0x79   : > { %v1777_v36 = vrot.slane %v4557_v44, 5  ;;  %v3410_v8 = vcombine.low %v1526_v7, %v1536_v63  ;;  %v1555_v15 = vrot.slane %v1554_v28, 4  ;;  %v3470_v47 = vcombine.low %v4696_v22, %v4703_v29  ;;  %v4726_v44 = vld [vmem:[%s4208_s10 + $0x28] sm:$0xf] }
  0x7a   : > { %v1771_v41 = vsel %vm4360_vm7, %v1769_v55, %v1770_v38  ;;  %v1775_v27 = vsel %vm4360_vm7, %v3421_v54, %v1774_v39  ;;  %v1776_v31 = vrot.slane %v1774_v39, 4  ;;  %v2258_v13 = vshrl.u32 %v4696_v22, 16  ;;  %v4777_v63 = vld [vmem:[%s4208_s10 + $0x48] sm:$0xf] }
  0x7b   : > { %v3428_v19 = vcombine.low %v1768_v4, %v1771_v41  ;;  %3734 = vmatprep.mubr.msk.bf16.mxu0 %vm332_vm1, %v3410_v8  ;;  %v1560_v43 = vsel %vm4349_vm6, %v1555_v15, %v1559_v51  ;;  %v2261_v42 = vshll.u32 %v4696_v22, 16  ;;  %v2271_v26 = vshrl.u32 %v4703_v29, 16  ;;  %v4755_v51 = vld [vmem:[%s4208_s10 + $0x3c] sm:$0xf]  ;;  %v4794_v41 = vld [vmem:[%s4208_s10 + $0x54] sm:$0xf] }
  0x7c   : > { %v3422_v40 = vrot.slane %v4540_v60, 9  ;;  %v3411_v37 = vcombine.low %v1550_v1, %v1560_v43  ;;  %v1778_v24 = vsel %vm4360_vm7, %v1776_v31, %v1777_v36  ;;  %v1781_v32 = vrot.slane %v4546_v6, 5  ;;  %v4785_v36 = vld [vmem:[%s4208_s10 + $0x4c] sm:$0xf]  ;;  %v4800_v43 = vld [vmem:[%s4208_s10 + $0x58] sm:$0xf] }
  0x7d   : > { %3740 = vmatprep.mubr.msk.bf16.mxu1 %vm332_vm1, %v3428_v19  ;;  %v1784_v50 = vrot.slane %v4575_v46, 5  ;;  %v3429_v30 = vcombine.low %v1775_v27, %v1778_v24  ;;  %v3471_v60 = vcombine.low %v4723_v21, %v4726_v44  ;;  %v2282_v53 = vshrl.u32 %v4723_v21, 16 }
  0x7e   : > { %v2285_v14 = vshll.u32 %v4723_v21, 16  ;;  %v1782_v6 = vsel %vm4360_vm7, %v3422_v40, %v1781_v32  ;;  %v1783_v12 = vrot.slane %v1781_v32, 4  ;;  %v2295_v46 = vshrl.u32 %v4726_v44, 16 }
  0x7f   : > { %3735 = vmatmul.mubr.msk.bf16.gmra.mrb[36].mxu0 %vm332_vm1, %v3411_v37  ;;  %v3423_v48 = vrot.slane %v4563_v34, 9  ;;  %3741 = vmatmul.mubr.msk.bf16.vlgmr.msra.gmra.mrb[40].mxu1 %vm332_vm1, %v3429_v30  ;;  %v1788_v2 = vrot.slane %v4567_v10, 5  ;;  %v1791_v3 = vrot.slane %v4599_v52, 5  ;;  %v3472_v7 = vcombine.low %v4740_v20, %v4743_v35  ;;  %v4813_v30 = vld [vmem:[%s4208_s10 + $0x60] sm:$0xf] }
  0x80   : > { %3758 = vmatprep.mubr.msk.bf16.mxu0 %vm332_vm1, %v3470_v47  ;;  %v2306_v61 = vshrl.u32 %v4740_v20, 16  ;;  %3775 = vmatpush3.bf16.msra.mxu1 %v4220_v16  ;;  %v1785_v34 = vsel %vm4360_vm7, %v1783_v12, %v1784_v50  ;;  %v2309_v38 = vshll.u32 %v4740_v20, 16  ;;  %v2319_v28 = vshrl.u32 %v4743_v35, 16 }
  0x81   : > { %v3424_v10 = vrot.slane %v4581_v18, 9  ;;  %v3430_v52 = vcombine.low %v1782_v6, %v1785_v34  ;;  %v1789_v4 = vsel %vm4360_vm7, %v3423_v48, %v1788_v2  ;;  %v1790_v55 = vrot.slane %v1788_v2, 4  ;;  %v4816_v6 = vld [vmem:[%s4208_s10 + $0x64] sm:$0xf] }
  0x82   : > { %v1795_v54 = vrot.slane %v4588_v11, 5  ;;  %v1798_v16 = vrot.slane %v4626_v59, 5  ;;  %v3473_v1 = vcombine.low %v4755_v51, %v4765_v56  ;;  %v2330_v39 = vshrl.u32 %v4755_v51, 16 }
  0x83   : > { %v2333_v18 = vshll.u32 %v4755_v51, 16  ;;  %3744 = vmatprep.mubr.msk.bf16.mxu1 %vm332_vm1, %v3430_v52  ;;  %v1792_v8 = vsel %vm4360_vm7, %v1790_v55, %v1791_v3  ;;  %v2343_v59 = vshrl.u32 %v4765_v56, 16  ;;  %v3425_v19 = vrot.slane %v4607_v5, 9  ;;  %v4826_v3 = vld [vmem:[%s4208_s10 + $0x6c] sm:$0xf] }
  0x84   : > { %v1796_v11 = vsel %vm4360_vm7, %v3424_v10, %v1795_v54  ;;  %v1797_v15 = vrot.slane %v1795_v54, 4  ;;  %v3431_v47 = vcombine.low %v1789_v4, %v1792_v8  ;;  %v1802_v27 = vrot.slane %v4612_v58, 5 }
  0x85   : > { %v1805_v31 = vrot.slane %v4653_v33, 5  ;;  %v3474_v37 = vcombine.low %v4777_v63, %v4785_v36  ;;  %v2354_v24 = vshrl.u32 %v4777_v63, 16  ;;  %v2357_v32 = vshll.u32 %v4777_v63, 16 }
  0x86   : > { %v1799_v40 = vsel %vm4360_vm7, %v1797_v15, %v1798_v16  ;;  %v1803_v58 = vsel %vm4360_vm7, %v3425_v19, %v1802_v27  ;;  %v1804_v33 = vrot.slane %v1802_v27, 4  ;;  %v2367_v50 = vshrl.u32 %v4785_v36, 16  ;;  %v3448_v19 = vld [vmem:[%s4208_s10 + $0x20] sm:$0x1] }
  0x87   : > { %3759 = vmatmul.mubr.msk.bf16.vlgmr.msra.gmra.mrb[40].mxu0 %vm332_vm1, %v3471_v60  ;;  %v3432_v5 = vcombine.low %v1796_v11, %v1799_v40  ;;  %3745 = vmatmul.mubr.msk.bf16.gmra.mrb[44].mxu1 %vm332_vm1, %v3431_v47  ;;  %v3426_v12 = vrot.slane %v4631_v0, 9  ;;  %v1809_v60 = vrot.slane %v4641_v9, 5  ;;  %v1812_v48 = vrot.slane %v4675_v57, 5  ;;  %v4836_v57 = vld [vmem:[%s4208_s10 + $0x70] sm:$0xf] }
  0x88   : > { %3793 = vmatpush3.bf16.msra.mxu0 %v4224_v17  ;;  %v3475_v2 = vcombine.low %v4794_v41, %v4800_v43  ;;  %3762 = vmatprep.mubr.msk.bf16.mxu0 %vm332_vm1, %v3472_v7  ;;  %v1806_v34 = vsel %vm4360_vm7, %v1804_v33, %v1805_v31  ;;  %v2378_v17 = vshrl.u32 %v4794_v41, 16  ;;  %v2381_v0 = vshll.u32 %v4794_v41, 16 }
  0x89   : > { %3748 = vmatprep.mubr.msk.bf16.mxu1 %vm332_vm1, %v3432_v5  ;;  %v2391_v9 = vshrl.u32 %v4800_v43, 16  ;;  %v3433_v10 = vcombine.low %v1803_v58, %v1806_v34  ;;  %v1810_v52 = vsel %vm4360_vm7, %v3426_v12, %v1809_v60  ;;  %v1811_v4 = vrot.slane %v1809_v60, 4 }
  0x8a   : > { %v3427_v7 = vrot.slane %v4660_v25, 9  ;;  %v1816_v55 = vrot.slane %v4663_v49, 5  ;;  %v1819_v54 = vrot.slane %v4683_v45, 5  ;;  %v3476_v16 = vcombine.low %v4813_v30, %v4816_v6 }
  0x8b   : > { %v2402_v8 = vshrl.u32 %v4813_v30, 16  ;;  %v1813_v11 = vsel %vm4360_vm7, %v1811_v4, %v1812_v48  ;;  %v2405_v15 = vshll.u32 %v4813_v30, 16  ;;  %v2415_v47 = vshrl.u32 %v4816_v6, 16 }
  0x8c   : > { %v3477_v25 = vcombine.low %v4826_v3, %v4836_v57  ;;  %v3434_v49 = vcombine.low %v1810_v52, %v1813_v11  ;;  %v1817_v45 = vsel %vm4360_vm7, %v3427_v7, %v1816_v55  ;;  %v1818_v27 = vrot.slane %v1816_v55, 4  ;;  %v4869_v52 = vld [vmem:[%s4208_s10 + $0x2c] sm:$0x1] }
  0x8d   : > { %v2426_v31 = vshrl.u32 %v4826_v3, 16  ;;  %v2429_v40 = vshll.u32 %v4826_v3, 16  ;;  %v2439_v5 = vshrl.u32 %v4836_v57, 16  ;;  %v2260_v58 = vrot.slane %v2258_v13, 4 }
  0x8e   : > { %v2263_v33 = vrot.slane %v2261_v42, 5  ;;  %v1820_v12 = vsel %vm4360_vm7, %v1818_v27, %v1819_v54  ;;  %v2267_v60 = vshll.u32 %v4703_v29, 16  ;;  %v2273_v48 = vrot.slane %v2271_v26, 4 }
  0x8f   : > { %3763 = vmatmul.mubr.msk.bf16.gmra.mrb[44].mxu0 %vm332_vm1, %v3473_v1  ;;  %v2277_v34 = vshll.u32 %v3448_v19, 16  ;;  %3749 = vmatmul.mubr.msk.bf16.gmra.mrb[48].mxu1 %vm332_vm1, %v3433_v10  ;;  %v3435_v13 = vcombine.low %v1817_v45, %v1820_v12  ;;  %v2284_v42 = vrot.slane %v2282_v53, 4  ;;  %v2287_v1 = vrot.slane %v2285_v14, 5 }
  0x90   : > { %3766 = vmatprep.mubr.msk.bf16.mxu0 %vm332_vm1, %v3474_v37  ;;  %v2264_v4 = vor.u32 %v2263_v33, %v2260_v58  ;;  %3752 = vmatprep.mubr.msk.bf16.mxu1 %vm332_vm1, %v3434_v49  ;;  %v2269_v7 = vrot.slane %v2267_v60, 5  ;;  %v2291_v55 = vshll.u32 %v4726_v44, 16  ;;  %v2297_v10 = vrot.slane %v2295_v46, 4  ;;  %v4887_v60 = vld [vmem:[%s4208_s10 + $0x38] sm:$0x1] }
  0x91   : > { %v2279_v26 = vrot.slane %v2277_v34, 5  ;;  %v2288_v37 = vor.u32 %v2287_v1, %v2284_v42  ;;  %v2301_v11 = vshll.u32 %v4869_v52, 16  ;;  %v3502_v45 = vrot.slane %v4696_v22, 9 }
  0x92   : > { %v2265_v54 = vrot.slane %v2264_v4, 4  ;;  %v2274_v53 = vor.u32 %v2273_v48, %v2269_v7  ;;  %v2293_v27 = vrot.slane %v2291_v55, 5  ;;  %v2655_v14 = vrot.slane %v4703_v29, 5 }
  0x93   : > { %v2658_v58 = vrot.slane %v3448_v19, 5  ;;  %v2289_v33 = vrot.slane %v2288_v37, 4  ;;  %v2303_v12 = vrot.slane %v2301_v11, 5  ;;  %v2308_v46 = vrot.slane %v2306_v61, 4 }
  0x94   : > { %v2270_v49 = vsel %vm4349_vm6, %v2265_v54, %v2269_v7  ;;  %v2275_v34 = vrot.slane %v2274_v53, 4  ;;  %v2298_v4 = vor.u32 %v2297_v10, %v2293_v27  ;;  %v2656_v22 = vsel %vm4360_vm7, %v3502_v45, %v2655_v14 }
  0x95   : > { %v2657_v48 = vrot.slane %v2655_v14, 4  ;;  %v2294_v29 = vsel %vm4349_vm6, %v2289_v33, %v2293_v27  ;;  %v2311_v19 = vrot.slane %v2309_v38, 5  ;;  %v2315_v42 = vshll.u32 %v4743_v35, 16 }
  0x96   : > { %v2321_v1 = vrot.slane %v2319_v28, 4  ;;  %v2280_v61 = vsel %vm4349_vm6, %v2275_v34, %v2279_v26  ;;  %v2299_v7 = vrot.slane %v2298_v4, 4  ;;  %v2325_v10 = vshll.u32 %v4887_v60, 16 }
  0x97   : > { %3767 = vmatmul.mubr.msk.bf16.gmra.mrb[48].mxu0 %vm332_vm1, %v3475_v2  ;;  %v2659_v55 = vsel %vm4360_vm7, %v2657_v48, %v2658_v58  ;;  %3753 = vmatmul.mubr.msk.bf16.gmra.mrb[52].mxu1 %vm332_vm1, %v3435_v13  ;;  %v3486_v38 = vcombine.low %v2270_v49, %v2280_v61  ;;  %v2312_v54 = vor.u32 %v2311_v19, %v2308_v46  ;;  %v2317_v37 = vrot.slane %v2315_v42, 5 }
  0x98   : > { %3770 = vmatprep.mubr.msk.bf16.mxu0 %vm332_vm1, %v3476_v16  ;;  %v3510_v28 = vcombine.low %v2656_v22, %v2659_v55  ;;  %v2304_v2 = vsel %vm4349_vm6, %v2299_v7, %v2303_v12  ;;  %v2327_v11 = vrot.slane %v2325_v10, 5  ;;  %v3503_v26 = vrot.slane %v4723_v21, 9  ;;  %v4918_v16 = vld [vmem:[%s4208_s10 + $0x44] sm:$0x1]  ;;  %v4944_v7 = vld [vmem:[%s4208_s10 + $0x50] sm:$0x1] }
  0x99   : > { %v2662_v45 = vrot.slane %v4726_v44, 5  ;;  %3776 = vmatprep.mubr.msk.bf16.mxu1 %vm332_vm1, %v3486_v38  ;;  %v3487_v53 = vcombine.low %v2294_v29, %v2304_v2  ;;  %v2313_v27 = vrot.slane %v2312_v54, 4  ;;  %v2322_v14 = vor.u32 %v2321_v1, %v2317_v37 }
  0x9a   : > { %v2665_v13 = vrot.slane %v4869_v52, 5  ;;  %v2332_v33 = vrot.slane %v2330_v39, 4  ;;  %v2335_v21 = vrot.slane %v2333_v18, 5  ;;  %v2339_v46 = vshll.u32 %v4765_v56, 16 }
  0x9b   : > { %v2663_v58 = vsel %vm4360_vm7, %v3503_v26, %v2662_v45  ;;  %v2664_v49 = vrot.slane %v2662_v45, 4  ;;  %v2318_v44 = vsel %vm4349_vm6, %v2313_v27, %v2317_v37  ;;  %v2323_v12 = vrot.slane %v2322_v14, 4 }
  0x9c   : > { %v2345_v52 = vrot.slane %v2343_v59, 4  ;;  %v2336_v4 = vor.u32 %v2335_v21, %v2332_v33  ;;  %v2349_v22 = vshll.u32 %v4918_v16, 16  ;;  %v3504_v39 = vrot.slane %v4740_v20, 9 }
  0x9d   : > { %v2666_v34 = vsel %vm4360_vm7, %v2664_v49, %v2665_v13  ;;  %v2328_v18 = vsel %vm4349_vm6, %v2323_v12, %v2327_v11  ;;  %v2341_v29 = vrot.slane %v2339_v46, 5  ;;  %v2669_v19 = vrot.slane %v4743_v35, 5 }
  0x9e   : > { %v3511_v48 = vcombine.low %v2663_v58, %v2666_v34  ;;  %v3488_v59 = vcombine.low %v2318_v44, %v2328_v18  ;;  %v2337_v42 = vrot.slane %v2336_v4, 4  ;;  %v2351_v1 = vrot.slane %v2349_v22, 5 }
  0x9f   : > { %3771 = vmatmul.mubr.msk.bf16.gmra.mrb[52].mxu0 %vm332_vm1, %v3477_v25  ;;  %v2672_v61 = vrot.slane %v4887_v60, 5  ;;  %3777 = vmatmul.mubr.msk.bf16.vlgmr.msra.gmra.mrb[56].mxu1 %vm332_vm1, %v3487_v53  ;;  %v2346_v20 = vor.u32 %v2345_v52, %v2341_v29  ;;  %v2670_v35 = vsel %vm4360_vm7, %v3504_v39, %v2669_v19  ;;  %v2671_v55 = vrot.slane %v2669_v19, 4 }
  0xa0   : > { %3794 = vmatprep.mubr.msk.bf16.mxu0 %vm332_vm1, %v3510_v28  ;;  %v2356_v10 = vrot.slane %v2354_v24, 4  ;;  %3780 = vmatprep.mubr.msk.bf16.mxu1 %vm332_vm1, %v3488_v59  ;;  %v2342_v25 = vsel %vm4349_vm6, %v2337_v42, %v2341_v29  ;;  %v2359_v60 = vrot.slane %v2357_v32, 5  ;;  %v2363_v38 = vshll.u32 %v4785_v36, 16  ;;  %v3466_v29 = vld [vmem:[%s4208_s10 + $0x68] sm:$0x1] }
  0xa1   : > { %v2369_v28 = vrot.slane %v2367_v50, 4  ;;  %v2347_v54 = vrot.slane %v2346_v20, 4  ;;  %v2673_v37 = vsel %vm4360_vm7, %v2671_v55, %v2672_v61  ;;  %v2373_v24 = vshll.u32 %v4944_v7, 16  ;;  %v4969_v50 = vld [vmem:[%s4208_s10 + $0x5c] sm:$0x1] }
  0xa2   : > { %v3505_v2 = vrot.slane %v4755_v51, 9  ;;  %v3512_v11 = vcombine.low %v2670_v35, %v2673_v37  ;;  %v2360_v26 = vor.u32 %v2359_v60, %v2356_v10  ;;  %v2365_v45 = vrot.slane %v2363_v38, 5 }
  0xa3   : > { %v2676_v53 = vrot.slane %v4765_v56, 5  ;;  %v2352_v32 = vsel %vm4349_vm6, %v2347_v54, %v2351_v1  ;;  %v2375_v27 = vrot.slane %v2373_v24, 5  ;;  %v2679_v14 = vrot.slane %v4918_v16, 5 }
  0xa4   : > { %v2380_v13 = vrot.slane %v2378_v17, 4  ;;  %v3489_v58 = vcombine.low %v2342_v25, %v2352_v32  ;;  %v2361_v49 = vrot.slane %v2360_v26, 4  ;;  %v2370_v33 = vor.u32 %v2369_v28, %v2365_v45  ;;  %v3469_v26 = vld [vmem:[%s4208_s10 + $0x74] sm:$0x1] }
  0xa5   : > { %v2677_v51 = vsel %vm4360_vm7, %v3505_v2, %v2676_v53  ;;  %v2678_v21 = vrot.slane %v2676_v53, 4  ;;  %v2383_v56 = vrot.slane %v2381_v0, 5  ;;  %v2387_v44 = vshll.u32 %v4800_v43, 16 }
  0xa6   : > { %v2393_v16 = vrot.slane %v2391_v9, 4  ;;  %v2366_v17 = vsel %vm4349_vm6, %v2361_v49, %v2365_v45  ;;  %v2371_v12 = vrot.slane %v2370_v33, 4  ;;  %v2397_v46 = vshll.u32 %v4969_v50, 16 }
  0xa7   : > { %3795 = vmatmul.mubr.msk.bf16.vlgmr.msra.gmra.mrb[56].mxu0 %vm332_vm1, %v3511_v48  ;;  %v3506_v52 = vrot.slane %v4777_v63, 9  ;;  %3781 = vmatmul.mubr.msk.bf16.gmra.mrb[60].mxu1 %vm332_vm1, %v3489_v58  ;;  %v2680_v0 = vsel %vm4360_vm7, %v2678_v21, %v2679_v14  ;;  %v2384_v34 = vor.u32 %v2383_v56, %v2380_v13  ;;  %v2389_v9 = vrot.slane %v2387_v44, 5 }
  0xa8   : > { %3798 = vmatprep.mubr.msk.bf16.mxu0 %vm332_vm1, %v3512_v11  ;;  %v2683_v4 = vrot.slane %v4785_v36, 5  ;;  %v2376_v22 = vsel %vm4349_vm6, %v2371_v12, %v2375_v27  ;;  %v3513_v39 = vcombine.low %v2677_v51, %v2680_v0  ;;  %v2399_v18 = vrot.slane %v2397_v46, 5 }
  0xa9   : > { %v2686_v48 = vrot.slane %v4944_v7, 5  ;;  %v3490_v63 = vcombine.low %v2366_v17, %v2376_v22  ;;  %v2385_v19 = vrot.slane %v2384_v34, 4  ;;  %v2394_v59 = vor.u32 %v2393_v16, %v2389_v9 }
  0xaa   : > { %v2684_v42 = vsel %vm4360_vm7, %v3506_v52, %v2683_v4  ;;  %v2685_v1 = vrot.slane %v2683_v4, 4  ;;  %v2404_v61 = vrot.slane %v2402_v8, 4  ;;  %v2407_v36 = vrot.slane %v2405_v15, 5 }
  0xab   : > { %v2411_v20 = vshll.u32 %v4816_v6, 16  ;;  %3784 = vmatprep.mubr.msk.bf16.mxu1 %vm332_vm1, %v3490_v63  ;;  %v2390_v7 = vsel %vm4349_vm6, %v2385_v19, %v2389_v9  ;;  %v2395_v35 = vrot.slane %v2394_v59, 4  ;;  %v2417_v55 = vrot.slane %v2415_v47, 4 }
  0xac   : > { %v2421_v10 = vshll.u32 %v3466_v29, 16  ;;  %v2687_v25 = vsel %vm4360_vm7, %v2685_v1, %v2686_v48  ;;  %v2408_v8 = vor.u32 %v2407_v36, %v2404_v61  ;;  %v3507_v15 = vrot.slane %v4794_v41, 9 }
  0xad   : > { %v2413_v60 = vrot.slane %v2411_v20, 5  ;;  %v2400_v38 = vsel %vm4349_vm6, %v2395_v35, %v2399_v18  ;;  %v3514_v28 = vcombine.low %v2684_v42, %v2687_v25  ;;  %v2690_v37 = vrot.slane %v4800_v43, 5 }
  0xae   : > { %v2423_v54 = vrot.slane %v2421_v10, 5  ;;  %v3491_v24 = vcombine.low %v2390_v7, %v2400_v38  ;;  %v2409_v2 = vrot.slane %v2408_v8, 4  ;;  %v2693_v11 = vrot.slane %v4969_v50, 5 }
  0xaf   : > { %3799 = vmatmul.mubr.msk.bf16.gmra.mrb[60].mxu0 %vm332_vm1, %v3513_v39  ;;  %v2418_v47 = vor.u32 %v2417_v55, %v2413_v60  ;;  %v2691_v41 = vsel %vm4360_vm7, %v3507_v15, %v2690_v37  ;;  %v2692_v45 = vrot.slane %v2690_v37, 4  ;;  %v2428_v53 = vrot.slane %v2426_v31, 4 }
  0xb0   : > { %3802 = vmatprep.mubr.msk.bf16.mxu0 %vm332_vm1, %v3514_v28  ;;  %v2431_v43 = vrot.slane %v2429_v40, 5  ;;  %3785 = vmatmul.mubr.msk.bf16.gmra.mrb[64].mxu1 %vm332_vm1, %v3491_v24  ;;  %v2414_v32 = vsel %vm4349_vm6, %v2409_v2, %v2413_v60  ;;  %v2435_v14 = vshll.u32 %v4836_v57, 16  ;;  %v2441_v50 = vrot.slane %v2439_v5, 4 }
  0xb1   : > { %v2419_v27 = vrot.slane %v2418_v47, 4  ;;  %v2694_v13 = vsel %vm4360_vm7, %v2692_v45, %v2693_v11  ;;  %v2445_v49 = vshll.u32 %v3469_v26, 16  ;;  %v3508_v31 = vrot.slane %v4813_v30, 9 }
  0xb2   : > { %v2432_v58 = vor.u32 %v2431_v43, %v2428_v53  ;;  %v3515_v33 = vcombine.low %v2691_v41, %v2694_v13  ;;  %v2437_v51 = vrot.slane %v2435_v14, 5  ;;  %v2697_v21 = vrot.slane %v4816_v6, 5 }
  0xb3   : > { %v2424_v40 = vsel %vm4349_vm6, %v2419_v27, %v2423_v54  ;;  %v2447_v16 = vrot.slane %v2445_v49, 5  ;;  %v2700_v17 = vrot.slane %v3466_v29, 5  ;;  %v3509_v52 = vrot.slane %v4826_v3, 9 }
  0xb4   : > { %v3492_v56 = vcombine.low %v2414_v32, %v2424_v40  ;;  %v2433_v44 = vrot.slane %v2432_v58, 4  ;;  %v2442_v12 = vor.u32 %v2441_v50, %v2437_v51  ;;  %v2698_v5 = vsel %vm4360_vm7, %v3508_v31, %v2697_v21 }
  0xb5   : > { %v2699_v46 = vrot.slane %v2697_v21, 4  ;;  %v2704_v30 = vrot.slane %v4836_v57, 5  ;;  %v2707_v0 = vrot.slane %v3469_v26, 5 }
  0xb6   : > { %3788 = vmatprep.mubr.msk.bf16.mxu1 %vm332_vm1, %v3492_v56  ;;  %v2438_v6 = vsel %vm4349_vm6, %v2433_v44, %v2437_v51  ;;  %v2443_v34 = vrot.slane %v2442_v12, 4 }
  0xb7   : > { %3803 = vmatmul.mubr.msk.bf16.gmra.mrb[64].mxu0 %vm332_vm1, %v3515_v33  ;;  %v2701_v9 = vsel %vm4360_vm7, %v2699_v46, %v2700_v17  ;;  %v2705_v22 = vsel %vm4360_vm7, %v3509_v52, %v2704_v30  ;;  %v2706_v39 = vrot.slane %v2704_v30, 4 }
  0xb8   : > { %v3516_v4 = vcombine.low %v2698_v5, %v2701_v9  ;;  %v2448_v3 = vsel %vm4349_vm6, %v2443_v34, %v2447_v16 }
  0xb9   : > { %v3493_v18 = vcombine.low %v2438_v6, %v2448_v3  ;;  %v2708_v57 = vsel %vm4360_vm7, %v2706_v39, %v2707_v0 }
  0xba   : > { %3806 = vmatprep.mubr.msk.bf16.mxu0 %vm332_vm1, %v3516_v4  ;;  %v3517_v48 = vcombine.low %v2705_v22, %v2708_v57 }
  0xbb   : > { %3789 = vmatmul.mubr.msk.bf16.gmra.mrb[68].mxu1 %vm332_vm1, %v3493_v18 }
  0xbf   : > { %3807 = vmatmul.mubr.msk.bf16.gmra.mrb[68].mxu0 %vm332_vm1, %v3517_v48 }
  0xf8   : > { %v3660_v29 = vpop.f32.mrb[0].mxu1 }
  0xf9   : > { %469 = vst.msk [vmem:[#allocation2 + $0x50] sm:$0xff] %vm458_vm8, %v3660_v29  ;;  %v427_v63 = vpop.f32.mrb[1].mxu1 }
  0xfa   : > { %467 = vst.msk [vmem:[#allocation2 + $0x40] sm:$0xff] %vm458_vm8, %v427_v63  ;;  %v3661_v62 = vpop.f32.mrb[2].mxu1 }
  0xfb   : > { %470 = vst.msk [vmem:[#allocation2 + $0x58] sm:$0xff] %vm458_vm8, %v3661_v62  ;;  %v430_v19 = vpop.f32.mrb[3].mxu1 }
  0xfc   : > { %468 = vst.msk [vmem:[#allocation2 + $0x48] sm:$0xff] %vm458_vm8, %v430_v19 }
  0xfe   : > { %v3652_v23 = vpop.f32.mrb[0].mxu0 }
  0xff   : > { %461 = vst.msk [vmem:[#allocation2 + $0x10] sm:$0xff] %vm458_vm8, %v3652_v23  ;;  %v395_v59 = vpop.f32.mrb[1].mxu0 }
 0x100   : > { %459 = vst.msk [vmem:[#allocation2] sm:$0xff] %vm458_vm8, %v395_v59  ;;  %v3653_v42 = vpop.f32.mrb[2].mxu0  ;;  %v828_v4 = vld [vmem:[#allocation2 + $0x50] sm:$0xff] }
 0x101   : > { %462 = vst.msk [vmem:[#allocation2 + $0x18] sm:$0xff] %vm458_vm8, %v3653_v42  ;;  %v398_v1 = vpop.f32.mrb[3].mxu0  ;;  %v826_v3 = vld [vmem:[#allocation2 + $0x40] sm:$0xff] }
 0x102   : > { %460 = vst.msk [vmem:[#allocation2 + $0x8] sm:$0xff] %vm458_vm8, %v398_v1  ;;  %v829_v29 = vld [vmem:[#allocation2 + $0x58] sm:$0xff] }
 0x103   : > { %v3664_v61 = vpop.f32.mrb[4].mxu1  ;;  %v827_v59 = vld [vmem:[#allocation2 + $0x48] sm:$0xff] }
 0x104   : > { %473 = vst.msk [vmem:[#allocation2 + $0x70] sm:$0xff] %vm458_vm8, %v3664_v61  ;;  %v443_v36 = vpop.f32.mrb[5].mxu1 }
 0x105   : > { %471 = vst.msk [vmem:[#allocation2 + $0x60] sm:$0xff] %vm458_vm8, %v443_v36  ;;  %v3665_v20 = vpop.f32.mrb[6].mxu1 }
 0x106   : > { %474 = vst.msk [vmem:[#allocation2 + $0x78] sm:$0xff] %vm458_vm8, %v3665_v20  ;;  %v446_v7 = vpop.f32.mrb[7].mxu1  ;;  %v3656_v35 = vpop.f32.mrb[4].mxu0  ;;  %v820_v8 = vld [vmem:[#allocation2 + $0x10] sm:$0xff] }
 0x107   : > { %472 = vst.msk [vmem:[#allocation2 + $0x68] sm:$0xff] %vm458_vm8, %v446_v7  ;;  %465 = vst.msk [vmem:[#allocation2 + $0x30] sm:$0xff] %vm458_vm8, %v3656_v35  ;;  %v411_v55 = vpop.f32.mrb[5].mxu0  ;;  %v818_v60 = vld [vmem:[#allocation2] sm:$0xff] }
 0x108   : > { %463 = vst.msk [vmem:[#allocation2 + $0x20] sm:$0xff] %vm458_vm8, %v411_v55  ;;  %v3657_v10 = vpop.f32.mrb[6].mxu0  ;;  %v821_v38 = vld [vmem:[#allocation2 + $0x18] sm:$0xff] }
 0x109   : > { %466 = vst.msk [vmem:[#allocation2 + $0x38] sm:$0xff] %vm458_vm8, %v3657_v10  ;;  %v414_v25 = vpop.f32.mrb[7].mxu0  ;;  %v819_v37 = vld [vmem:[#allocation2 + $0x8] sm:$0xff] }
 0x10a   : > { %464 = vst.msk [vmem:[#allocation2 + $0x28] sm:$0xff] %vm458_vm8, %v414_v25 }
 0x10c   : > { %v3670_v15 = vpop.f32.mrb[8].mxu1 }
 0x10d   : > { %v836_v28 = vadd.f32 %v3670_v15, %v820_v8  ;;  %v755_v54 = vpop.f32.mrb[9].mxu1  ;;  %v832_v15 = vld [vmem:[#allocation2 + $0x70] sm:$0xff] }
 0x10e   : > { %v834_v24 = vadd.f32 %v818_v60, %v755_v54  ;;  %v3671_v2 = vpop.f32.mrb[10].mxu1  ;;  %v824_v32 = vld [vmem:[#allocation2 + $0x30] sm:$0xff] }
 0x10f   : > { %852 = vst.msk [vmem:[#allocation2 + $0x10] sm:$0xff] %vm458_vm8, %v836_v28  ;;  %v837_v47 = vadd.f32 %v3671_v2, %v821_v38  ;;  %v758_v11 = vpop.f32.mrb[11].mxu1  ;;  %v3688_v26 = vpop.f32.mrb[8].mxu0  ;;  %v822_v27 = vld [vmem:[#allocation2 + $0x20] sm:$0xff] }
 0x110   : > { %850 = vst.msk [vmem:[#allocation2] sm:$0xff] %vm458_vm8, %v834_v24  ;;  %v835_v41 = vadd.f32 %v819_v37, %v758_v11  ;;  %v1018_v45 = vpop.f32.mrb[9].mxu0  ;;  %v825_v13 = vld [vmem:[#allocation2 + $0x38] sm:$0xff]  ;;  %v830_v24 = vld [vmem:[#allocation2 + $0x60] sm:$0xff] }
 0x111   : > { %853 = vst.msk [vmem:[#allocation2 + $0x18] sm:$0xff] %vm458_vm8, %v837_v47  ;;  %v3689_v53 = vpop.f32.mrb[10].mxu0  ;;  %v823_v33 = vld [vmem:[#allocation2 + $0x28] sm:$0xff] }
 0x112   : > { %851 = vst.msk [vmem:[#allocation2 + $0x8] sm:$0xff] %vm458_vm8, %v835_v41  ;;  %v1021_v43 = vpop.f32.mrb[11].mxu0 }
 0x116   : > { %v1083_v14 = vld [vmem:[#allocation2 + $0x10] sm:$0xff]  ;;  %v3674_v50 = vpop.f32.mrb[12].mxu1 }
 0x117   : > { %v1099_v58 = vadd.f32 %v3688_v26, %v1083_v14  ;;  %v840_v49 = vadd.f32 %v3674_v50, %v824_v32  ;;  %v1081_v31 = vld [vmem:[#allocation2] sm:$0xff]  ;;  %v771_v40 = vpop.f32.mrb[13].mxu1  ;;  %v3692_v51 = vpop.f32.mrb[12].mxu0  ;;  %v831_v50 = vld [vmem:[#allocation2 + $0x68] sm:$0xff] }
 0x118   : > { %v1097_v21 = vadd.f32 %v1081_v31, %v1018_v45  ;;  %v838_v56 = vadd.f32 %v822_v27, %v771_v40  ;;  %v1084_v44 = vld [vmem:[#allocation2 + $0x18] sm:$0xff]  ;;  %v3675_v16 = vpop.f32.mrb[14].mxu1  ;;  %v1034_v17 = vpop.f32.mrb[13].mxu0 }
 0x119   : > { %1115 = vst.msk [vmem:[#allocation2 + $0x10] sm:$0xff] %vm458_vm8, %v1099_v58  ;;  %856 = vst.msk [vmem:[#allocation2 + $0x30] sm:$0xff] %vm458_vm8, %v840_v49  ;;  %v1100_v12 = vadd.f32 %v3689_v53, %v1084_v44  ;;  %v841_v5 = vadd.f32 %v3675_v16, %v825_v13  ;;  %v1082_v46 = vld [vmem:[#allocation2 + $0x8] sm:$0xff]  ;;  %v774_v52 = vpop.f32.mrb[15].mxu1  ;;  %v3693_v30 = vpop.f32.mrb[14].mxu0  ;;  %v833_v45 = vld [vmem:[#allocation2 + $0x78] sm:$0xff] }
 0x11a   : > { %1113 = vst.msk [vmem:[#allocation2] sm:$0xff] %vm458_vm8, %v1097_v21  ;;  %854 = vst.msk [vmem:[#allocation2 + $0x20] sm:$0xff] %vm458_vm8, %v838_v56  ;;  %v1098_v0 = vadd.f32 %v1082_v46, %v1021_v43  ;;  %v839_v6 = vadd.f32 %v823_v33, %v774_v52  ;;  %v1037_v34 = vpop.f32.mrb[15].mxu0 }
 0x11b   : > { %1116 = vst.msk [vmem:[#allocation2 + $0x18] sm:$0xff] %vm458_vm8, %v1100_v12  ;;  %857 = vst.msk [vmem:[#allocation2 + $0x38] sm:$0xff] %vm458_vm8, %v841_v5 }
 0x11c   : > { %1114 = vst.msk [vmem:[#allocation2 + $0x8] sm:$0xff] %vm458_vm8, %v1098_v0  ;;  %855 = vst.msk [vmem:[#allocation2 + $0x28] sm:$0xff] %vm458_vm8, %v839_v6 }
 0x11f   : > { %v3678_v9 = vpop.f32.mrb[16].mxu1 }
 0x120   : > { %v844_v22 = vadd.f32 %v3678_v9, %v828_v4  ;;  %v787_v39 = vpop.f32.mrb[17].mxu1  ;;  %v1087_v18 = vld [vmem:[#allocation2 + $0x30] sm:$0xff] }
 0x121   : > { %v842_v57 = vadd.f32 %v826_v3, %v787_v39  ;;  %v3679_v48 = vpop.f32.mrb[18].mxu1  ;;  %v1103_v63 = vadd.f32 %v3692_v51, %v1087_v18  ;;  %v1085_v62 = vld [vmem:[#allocation2 + $0x20] sm:$0xff]  ;;  %v1323_v33 = vld [vmem:[#allocation2 + $0x10] sm:$0xff] }
 0x122   : > { %860 = vst.msk [vmem:[#allocation2 + $0x50] sm:$0xff] %vm458_vm8, %v844_v22  ;;  %v845_v19 = vadd.f32 %v3679_v48, %v829_v29  ;;  %v790_v23 = vpop.f32.mrb[19].mxu1  ;;  %v1101_v1 = vadd.f32 %v1085_v62, %v1034_v17  ;;  %v1088_v61 = vld [vmem:[#allocation2 + $0x38] sm:$0xff]  ;;  %v1321_v56 = vld [vmem:[#allocation2] sm:$0xff] }
 0x123   : > { %v3696_v42 = vpop.f32.mrb[16].mxu0  ;;  %858 = vst.msk [vmem:[#allocation2 + $0x40] sm:$0xff] %vm458_vm8, %v842_v57  ;;  %v843_v36 = vadd.f32 %v827_v59, %v790_v23  ;;  %1119 = vst.msk [vmem:[#allocation2 + $0x30] sm:$0xff] %vm458_vm8, %v1103_v63  ;;  %v1104_v7 = vadd.f32 %v3693_v30, %v1088_v61  ;;  %v1086_v35 = vld [vmem:[#allocation2 + $0x28] sm:$0xff]  ;;  %v1324_v12 = vld [vmem:[#allocation2 + $0x18] sm:$0xff] }
 0x124   : > { %v1050_v20 = vpop.f32.mrb[17].mxu0  ;;  %861 = vst.msk [vmem:[#allocation2 + $0x58] sm:$0xff] %vm458_vm8, %v845_v19  ;;  %1117 = vst.msk [vmem:[#allocation2 + $0x20] sm:$0xff] %vm458_vm8, %v1101_v1  ;;  %v1102_v10 = vadd.f32 %v1086_v35, %v1037_v34  ;;  %v1322_v0 = vld [vmem:[#allocation2 + $0x8] sm:$0xff] }
 0x125   : > { %v3697_v55 = vpop.f32.mrb[18].mxu0  ;;  %859 = vst.msk [vmem:[#allocation2 + $0x48] sm:$0xff] %vm458_vm8, %v843_v36  ;;  %1120 = vst.msk [vmem:[#allocation2 + $0x38] sm:$0xff] %vm458_vm8, %v1104_v7 }
 0x126   : > { %v1053_v25 = vpop.f32.mrb[19].mxu0  ;;  %1118 = vst.msk [vmem:[#allocation2 + $0x28] sm:$0xff] %vm458_vm8, %v1102_v10 }
 0x129   : > { %v1091_v8 = vld [vmem:[#allocation2 + $0x50] sm:$0xff] }
 0x12a   : > { %v3682_v60 = vpop.f32.mrb[20].mxu1  ;;  %v1107_v38 = vadd.f32 %v3696_v42, %v1091_v8  ;;  %v1089_v54 = vld [vmem:[#allocation2 + $0x40] sm:$0xff]  ;;  %v1327_v29 = vld [vmem:[#allocation2 + $0x30] sm:$0xff] }
 0x12b   : > { %v848_v28 = vadd.f32 %v3682_v60, %v832_v15  ;;  %v803_v37 = vpop.f32.mrb[21].mxu1  ;;  %v3700_v2 = vpop.f32.mrb[20].mxu0  ;;  %v1105_v47 = vadd.f32 %v1089_v54, %v1050_v20  ;;  %v1092_v26 = vld [vmem:[#allocation2 + $0x58] sm:$0xff]  ;;  %v1325_v23 = vld [vmem:[#allocation2 + $0x20] sm:$0xff] }
 0x12c   : > { %v846_v11 = vadd.f32 %v830_v24, %v803_v37  ;;  %v3683_v41 = vpop.f32.mrb[22].mxu1  ;;  %v1066_v53 = vpop.f32.mrb[21].mxu0  ;;  %1123 = vst.msk [vmem:[#allocation2 + $0x50] sm:$0xff] %vm458_vm8, %v1107_v38  ;;  %v1108_v43 = vadd.f32 %v3697_v55, %v1092_v26  ;;  %v1090_v27 = vld [vmem:[#allocation2 + $0x48] sm:$0xff]  ;;  %v1328_v61 = vld [vmem:[#allocation2 + $0x38] sm:$0xff] }
 0x12d   : > { %864 = vst.msk [vmem:[#allocation2 + $0x70] sm:$0xff] %vm458_vm8, %v848_v28  ;;  %v849_v32 = vadd.f32 %v3683_v41, %v833_v45  ;;  %v806_v14 = vpop.f32.mrb[23].mxu1  ;;  %v3701_v13 = vpop.f32.mrb[22].mxu0  ;;  %1121 = vst.msk [vmem:[#allocation2 + $0x40] sm:$0xff] %vm458_vm8, %v1105_v47  ;;  %v1106_v58 = vadd.f32 %v1090_v27, %v1053_v25  ;;  %v1326_v55 = vld [vmem:[#allocation2 + $0x28] sm:$0xff] }
 0x12e   : > { %862 = vst.msk [vmem:[#allocation2 + $0x60] sm:$0xff] %vm458_vm8, %v846_v11  ;;  %v847_v49 = vadd.f32 %v831_v50, %v806_v14  ;;  %v1069_v31 = vpop.f32.mrb[23].mxu0  ;;  %1124 = vst.msk [vmem:[#allocation2 + $0x58] sm:$0xff] %vm458_vm8, %v1108_v43 }
 0x12f   : > { %865 = vst.msk [vmem:[#allocation2 + $0x78] sm:$0xff] %vm458_vm8, %v849_v32  ;;  %1122 = vst.msk [vmem:[#allocation2 + $0x48] sm:$0xff] %vm458_vm8, %v1106_v58 }
 0x130   : > { %863 = vst.msk [vmem:[#allocation2 + $0x68] sm:$0xff] %vm458_vm8, %v847_v49 }
 0x132   : > { %v3706_v40 = vpop.f32.mrb[24].mxu1 }
 0x133   : > { %v1339_v51 = vadd.f32 %v3706_v40, %v1323_v33  ;;  %v1258_v21 = vpop.f32.mrb[25].mxu1  ;;  %v1331_v37 = vld [vmem:[#allocation2 + $0x50] sm:$0xff] }
 0x134   : > { %v1095_v44 = vld [vmem:[#allocation2 + $0x70] sm:$0xff]  ;;  %v1337_v16 = vadd.f32 %v1321_v56, %v1258_v21  ;;  %v3707_v17 = vpop.f32.mrb[26].mxu1  ;;  %v1329_v11 = vld [vmem:[#allocation2 + $0x40] sm:$0xff] }
 0x135   : > { %v1111_v5 = vadd.f32 %v3700_v2, %v1095_v44  ;;  %v1093_v46 = vld [vmem:[#allocation2 + $0x60] sm:$0xff]  ;;  %1355 = vst.msk [vmem:[#allocation2 + $0x10] sm:$0xff] %vm458_vm8, %v1339_v51  ;;  %v1340_v52 = vadd.f32 %v3707_v17, %v1324_v12  ;;  %v1261_v30 = vpop.f32.mrb[27].mxu1  ;;  %v1332_v43 = vld [vmem:[#allocation2 + $0x58] sm:$0xff] }
 0x136   : > { %v1109_v6 = vadd.f32 %v1093_v46, %v1066_v53  ;;  %v1096_v34 = vld [vmem:[#allocation2 + $0x78] sm:$0xff]  ;;  %1353 = vst.msk [vmem:[#allocation2] sm:$0xff] %vm458_vm8, %v1337_v16  ;;  %v1338_v9 = vadd.f32 %v1322_v0, %v1261_v30  ;;  %v1330_v58 = vld [vmem:[#allocation2 + $0x48] sm:$0xff] }
 0x137   : > { %1127 = vst.msk [vmem:[#allocation2 + $0x70] sm:$0xff] %vm458_vm8, %v1111_v5  ;;  %v1112_v4 = vadd.f32 %v3701_v13, %v1096_v34  ;;  %v1094_v22 = vld [vmem:[#allocation2 + $0x68] sm:$0xff]  ;;  %1356 = vst.msk [vmem:[#allocation2 + $0x18] sm:$0xff] %vm458_vm8, %v1340_v52  ;;  %v3724_v39 = vpop.f32.mrb[24].mxu0 }
 0x138   : > { %1125 = vst.msk [vmem:[#allocation2 + $0x60] sm:$0xff] %vm458_vm8, %v1109_v6  ;;  %v1110_v3 = vadd.f32 %v1094_v22, %v1069_v31  ;;  %1354 = vst.msk [vmem:[#allocation2 + $0x8] sm:$0xff] %vm458_vm8, %v1338_v9  ;;  %v1646_v18 = vpop.f32.mrb[25].mxu0 }
 0x139   : > { %1128 = vst.msk [vmem:[#allocation2 + $0x78] sm:$0xff] %vm458_vm8, %v1112_v4  ;;  %v3725_v57 = vpop.f32.mrb[26].mxu0 }
 0x13a   : > { %1126 = vst.msk [vmem:[#allocation2 + $0x68] sm:$0xff] %vm458_vm8, %v1110_v3  ;;  %v3710_v48 = vpop.f32.mrb[28].mxu1  ;;  %v1649_v63 = vpop.f32.mrb[27].mxu0 }
 0x13b   : > { %v1343_v62 = vadd.f32 %v3710_v48, %v1327_v29  ;;  %v1274_v19 = vpop.f32.mrb[29].mxu1 }
 0x13c   : > { %v1711_v59 = vld [vmem:[#allocation2 + $0x10] sm:$0xff]  ;;  %v1341_v42 = vadd.f32 %v1325_v23, %v1274_v19  ;;  %v3711_v1 = vpop.f32.mrb[30].mxu1 }
 0x13d   : > { %v1727_v36 = vadd.f32 %v3724_v39, %v1711_v59  ;;  %1359 = vst.msk [vmem:[#allocation2 + $0x30] sm:$0xff] %vm458_vm8, %v1343_v62  ;;  %v1709_v20 = vld [vmem:[#allocation2] sm:$0xff]  ;;  %v1344_v7 = vadd.f32 %v3711_v1, %v1328_v61  ;;  %v1277_v35 = vpop.f32.mrb[31].mxu1 }
 0x13e   : > { %v1725_v10 = vadd.f32 %v1709_v20, %v1646_v18  ;;  %1357 = vst.msk [vmem:[#allocation2 + $0x20] sm:$0xff] %vm458_vm8, %v1341_v42  ;;  %v1712_v25 = vld [vmem:[#allocation2 + $0x18] sm:$0xff]  ;;  %v1342_v8 = vadd.f32 %v1326_v55, %v1277_v35  ;;  %v1335_v16 = vld [vmem:[#allocation2 + $0x70] sm:$0xff] }
 0x13f   : > { %1743 = vst.msk [vmem:[#allocation2 + $0x10] sm:$0xff] %vm458_vm8, %v1727_v36  ;;  %v1728_v60 = vadd.f32 %v3725_v57, %v1712_v25  ;;  %1360 = vst.msk [vmem:[#allocation2 + $0x38] sm:$0xff] %vm458_vm8, %v1344_v7  ;;  %v1710_v15 = vld [vmem:[#allocation2 + $0x8] sm:$0xff]  ;;  %v1333_v46 = vld [vmem:[#allocation2 + $0x60] sm:$0xff] }
 0x140   : > { %1741 = vst.msk [vmem:[#allocation2] sm:$0xff] %vm458_vm8, %v1725_v10  ;;  %v1726_v38 = vadd.f32 %v1710_v15, %v1649_v63  ;;  %1358 = vst.msk [vmem:[#allocation2 + $0x28] sm:$0xff] %vm458_vm8, %v1342_v8  ;;  %v1336_v34 = vld [vmem:[#allocation2 + $0x78] sm:$0xff] }
 0x141   : > { %1744 = vst.msk [vmem:[#allocation2 + $0x18] sm:$0xff] %vm458_vm8, %v1728_v60  ;;  %v3728_v28 = vpop.f32.mrb[28].mxu0  ;;  %v1334_v18 = vld [vmem:[#allocation2 + $0x68] sm:$0xff] }
 0x142   : > { %1742 = vst.msk [vmem:[#allocation2 + $0x8] sm:$0xff] %vm458_vm8, %v1726_v38  ;;  %v3714_v54 = vpop.f32.mrb[32].mxu1  ;;  %v1662_v24 = vpop.f32.mrb[29].mxu0 }
 0x143   : > { %v1347_v2 = vadd.f32 %v3714_v54, %v1331_v37  ;;  %v1290_v47 = vpop.f32.mrb[33].mxu1  ;;  %v3729_v26 = vpop.f32.mrb[30].mxu0 }
 0x144   : > { %v1715_v41 = vld [vmem:[#allocation2 + $0x30] sm:$0xff]  ;;  %v1345_v45 = vadd.f32 %v1329_v11, %v1290_v47  ;;  %v3715_v53 = vpop.f32.mrb[34].mxu1  ;;  %v1665_v32 = vpop.f32.mrb[31].mxu0 }
 0x145   : > { %v1731_v27 = vadd.f32 %v3728_v28, %v1715_v41  ;;  %1363 = vst.msk [vmem:[#allocation2 + $0x50] sm:$0xff] %vm458_vm8, %v1347_v2  ;;  %v1713_v14 = vld [vmem:[#allocation2 + $0x20] sm:$0xff]  ;;  %v1348_v50 = vadd.f32 %v3715_v53, %v1332_v43  ;;  %v1293_v13 = vpop.f32.mrb[35].mxu1 }
 0x146   : > { %v1729_v49 = vadd.f32 %v1713_v14, %v1662_v24  ;;  %1361 = vst.msk [vmem:[#allocation2 + $0x40] sm:$0xff] %vm458_vm8, %v1345_v45  ;;  %v1716_v31 = vld [vmem:[#allocation2 + $0x38] sm:$0xff]  ;;  %v1346_v40 = vadd.f32 %v1330_v58, %v1293_v13  ;;  %v1971_v1 = vld [vmem:[#allocation2 + $0x10] sm:$0xff] }
 0x147   : > { %1747 = vst.msk [vmem:[#allocation2 + $0x30] sm:$0xff] %vm458_vm8, %v1731_v27  ;;  %v1732_v33 = vadd.f32 %v3729_v26, %v1716_v31  ;;  %1364 = vst.msk [vmem:[#allocation2 + $0x58] sm:$0xff] %vm458_vm8, %v1348_v50  ;;  %v1714_v51 = vld [vmem:[#allocation2 + $0x28] sm:$0xff]  ;;  %v1969_v7 = vld [vmem:[#allocation2] sm:$0xff] }
 0x148   : > { %1745 = vst.msk [vmem:[#allocation2 + $0x20] sm:$0xff] %vm458_vm8, %v1729_v49  ;;  %v1730_v21 = vadd.f32 %v1714_v51, %v1665_v32  ;;  %1362 = vst.msk [vmem:[#allocation2 + $0x48] sm:$0xff] %vm458_vm8, %v1346_v40  ;;  %v1972_v8 = vld [vmem:[#allocation2 + $0x18] sm:$0xff] }
 0x149   : > { %1748 = vst.msk [vmem:[#allocation2 + $0x38] sm:$0xff] %vm458_vm8, %v1732_v33  ;;  %v1970_v54 = vld [vmem:[#allocation2 + $0x8] sm:$0xff] }
 0x14a   : > { %v3732_v56 = vpop.f32.mrb[32].mxu0  ;;  %1746 = vst.msk [vmem:[#allocation2 + $0x28] sm:$0xff] %vm458_vm8, %v1730_v21  ;;  %v3718_v44 = vpop.f32.mrb[36].mxu1 }
 0x14b   : > { %v1678_v17 = vpop.f32.mrb[33].mxu0  ;;  %v1351_v12 = vadd.f32 %v3718_v44, %v1335_v16  ;;  %v1306_v5 = vpop.f32.mrb[37].mxu1 }
 0x14c   : > { %v3733_v52 = vpop.f32.mrb[34].mxu0  ;;  %v1719_v30 = vld [vmem:[#allocation2 + $0x50] sm:$0xff]  ;;  %v1349_v0 = vadd.f32 %v1333_v46, %v1306_v5  ;;  %v3719_v6 = vpop.f32.mrb[38].mxu1 }
 0x14d   : > { %v1681_v9 = vpop.f32.mrb[35].mxu0  ;;  %v1735_v4 = vadd.f32 %v3732_v56, %v1719_v30  ;;  %1367 = vst.msk [vmem:[#allocation2 + $0x70] sm:$0xff] %vm458_vm8, %v1351_v12  ;;  %v1717_v22 = vld [vmem:[#allocation2 + $0x40] sm:$0xff]  ;;  %v1352_v39 = vadd.f32 %v3719_v6, %v1336_v34  ;;  %v1309_v3 = vpop.f32.mrb[39].mxu1 }
 0x14e   : > { %v1733_v57 = vadd.f32 %v1717_v22, %v1678_v17  ;;  %1365 = vst.msk [vmem:[#allocation2 + $0x60] sm:$0xff] %vm458_vm8, %v1349_v0  ;;  %v1720_v48 = vld [vmem:[#allocation2 + $0x58] sm:$0xff]  ;;  %v1350_v29 = vadd.f32 %v1334_v18, %v1309_v3  ;;  %v1975_v53 = vld [vmem:[#allocation2 + $0x30] sm:$0xff] }
 0x14f   : > { %1751 = vst.msk [vmem:[#allocation2 + $0x50] sm:$0xff] %vm458_vm8, %v1735_v4  ;;  %v1736_v63 = vadd.f32 %v3733_v52, %v1720_v48  ;;  %1368 = vst.msk [vmem:[#allocation2 + $0x78] sm:$0xff] %vm458_vm8, %v1352_v39  ;;  %v1718_v62 = vld [vmem:[#allocation2 + $0x48] sm:$0xff]  ;;  %v1973_v14 = vld [vmem:[#allocation2 + $0x20] sm:$0xff] }
 0x150   : > { %1749 = vst.msk [vmem:[#allocation2 + $0x40] sm:$0xff] %vm458_vm8, %v1733_v57  ;;  %v1734_v19 = vadd.f32 %v1718_v62, %v1681_v9  ;;  %1366 = vst.msk [vmem:[#allocation2 + $0x68] sm:$0xff] %vm458_vm8, %v1350_v29  ;;  %v1976_v31 = vld [vmem:[#allocation2 + $0x38] sm:$0xff] }
 0x151   : > { %1752 = vst.msk [vmem:[#allocation2 + $0x58] sm:$0xff] %vm458_vm8, %v1736_v63  ;;  %v1974_v44 = vld [vmem:[#allocation2 + $0x28] sm:$0xff] }
 0x152   : > { %v3736_v23 = vpop.f32.mrb[36].mxu0  ;;  %1750 = vst.msk [vmem:[#allocation2 + $0x48] sm:$0xff] %vm458_vm8, %v1734_v19  ;;  %v3742_v42 = vpop.f32.mrb[40].mxu1 }
 0x153   : > { %v1694_v59 = vpop.f32.mrb[37].mxu0  ;;  %v1987_v61 = vadd.f32 %v3742_v42, %v1971_v1  ;;  %v1906_v20 = vpop.f32.mrb[41].mxu1 }
 0x154   : > { %v3737_v36 = vpop.f32.mrb[38].mxu0  ;;  %v1723_v35 = vld [vmem:[#allocation2 + $0x70] sm:$0xff]  ;;  %v1985_v55 = vadd.f32 %v1969_v7, %v1906_v20  ;;  %v3743_v25 = vpop.f32.mrb[42].mxu1 }
 0x155   : > { %v1697_v10 = vpop.f32.mrb[39].mxu0  ;;  %v1739_v60 = vadd.f32 %v3736_v23, %v1723_v35  ;;  %v1721_v15 = vld [vmem:[#allocation2 + $0x60] sm:$0xff]  ;;  %2003 = vst.msk [vmem:[#allocation2 + $0x10] sm:$0xff] %vm458_vm8, %v1987_v61  ;;  %v1988_v38 = vadd.f32 %v3743_v25, %v1972_v8  ;;  %v1909_v28 = vpop.f32.mrb[43].mxu1 }
 0x156   : > { %v1737_v37 = vadd.f32 %v1721_v15, %v1694_v59  ;;  %v1724_v24 = vld [vmem:[#allocation2 + $0x78] sm:$0xff]  ;;  %2001 = vst.msk [vmem:[#allocation2] sm:$0xff] %vm458_vm8, %v1985_v55  ;;  %v1986_v2 = vadd.f32 %v1970_v54, %v1909_v28  ;;  %v1979_v6 = vld [vmem:[#allocation2 + $0x50] sm:$0xff] }
 0x157   : > { %1755 = vst.msk [vmem:[#allocation2 + $0x70] sm:$0xff] %vm458_vm8, %v1739_v60  ;;  %v1740_v47 = vadd.f32 %v3737_v36, %v1724_v24  ;;  %v1722_v11 = vld [vmem:[#allocation2 + $0x68] sm:$0xff]  ;;  %2004 = vst.msk [vmem:[#allocation2 + $0x18] sm:$0xff] %vm458_vm8, %v1988_v38  ;;  %v1977_v22 = vld [vmem:[#allocation2 + $0x40] sm:$0xff] }
 0x158   : > { %1753 = vst.msk [vmem:[#allocation2 + $0x60] sm:$0xff] %vm458_vm8, %v1737_v37  ;;  %v1738_v26 = vadd.f32 %v1722_v11, %v1697_v10  ;;  %2002 = vst.msk [vmem:[#allocation2 + $0x8] sm:$0xff] %vm458_vm8, %v1986_v2  ;;  %v1980_v48 = vld [vmem:[#allocation2 + $0x58] sm:$0xff] }
 0x159   : > { %1756 = vst.msk [vmem:[#allocation2 + $0x78] sm:$0xff] %vm458_vm8, %v1740_v47  ;;  %v1978_v59 = vld [vmem:[#allocation2 + $0x48] sm:$0xff] }
 0x15a   : > { %v3760_v41 = vpop.f32.mrb[40].mxu0  ;;  %1754 = vst.msk [vmem:[#allocation2 + $0x68] sm:$0xff] %vm458_vm8, %v1738_v26  ;;  %v3746_v45 = vpop.f32.mrb[44].mxu1 }
 0x15b   : > { %v2146_v43 = vpop.f32.mrb[41].mxu0  ;;  %v1991_v32 = vadd.f32 %v3746_v45, %v1975_v53  ;;  %v1922_v27 = vpop.f32.mrb[45].mxu1 }
 0x15c   : > { %v3761_v50 = vpop.f32.mrb[42].mxu0  ;;  %v2211_v13 = vld [vmem:[#allocation2 + $0x10] sm:$0xff]  ;;  %v1989_v58 = vadd.f32 %v1973_v14, %v1922_v27  ;;  %v3747_v49 = vpop.f32.mrb[46].mxu1 }
 0x15d   : > { %v2149_v40 = vpop.f32.mrb[43].mxu0  ;;  %v2227_v33 = vadd.f32 %v3760_v41, %v2211_v13  ;;  %2007 = vst.msk [vmem:[#allocation2 + $0x30] sm:$0xff] %vm458_vm8, %v1991_v32  ;;  %v2209_v51 = vld [vmem:[#allocation2] sm:$0xff]  ;;  %v1992_v21 = vadd.f32 %v3747_v49, %v1976_v31  ;;  %v1925_v56 = vpop.f32.mrb[47].mxu1 }
 0x15e   : > { %v2225_v16 = vadd.f32 %v2209_v51, %v2146_v43  ;;  %2005 = vst.msk [vmem:[#allocation2 + $0x20] sm:$0xff] %vm458_vm8, %v1989_v58  ;;  %v2212_v17 = vld [vmem:[#allocation2 + $0x18] sm:$0xff]  ;;  %v1990_v12 = vadd.f32 %v1974_v44, %v1925_v56  ;;  %v1983_v10 = vld [vmem:[#allocation2 + $0x70] sm:$0xff] }
 0x15f   : > { %2243 = vst.msk [vmem:[#allocation2 + $0x10] sm:$0xff] %vm458_vm8, %v2227_v33  ;;  %v2228_v5 = vadd.f32 %v3761_v50, %v2212_v17  ;;  %2008 = vst.msk [vmem:[#allocation2 + $0x38] sm:$0xff] %vm458_vm8, %v1992_v21  ;;  %v2210_v46 = vld [vmem:[#allocation2 + $0x8] sm:$0xff]  ;;  %v1981_v15 = vld [vmem:[#allocation2 + $0x60] sm:$0xff] }
 0x160   : > { %2241 = vst.msk [vmem:[#allocation2] sm:$0xff] %vm458_vm8, %v2225_v16  ;;  %v2226_v52 = vadd.f32 %v2210_v46, %v2149_v40  ;;  %2006 = vst.msk [vmem:[#allocation2 + $0x28] sm:$0xff] %vm458_vm8, %v1990_v12  ;;  %v1984_v24 = vld [vmem:[#allocation2 + $0x78] sm:$0xff] }
 0x161   : > { %2244 = vst.msk [vmem:[#allocation2 + $0x18] sm:$0xff] %vm458_vm8, %v2228_v5  ;;  %v1982_v45 = vld [vmem:[#allocation2 + $0x68] sm:$0xff] }
 0x162   : > { %v3764_v30 = vpop.f32.mrb[44].mxu0  ;;  %2242 = vst.msk [vmem:[#allocation2 + $0x8] sm:$0xff] %vm458_vm8, %v2226_v52  ;;  %v3750_v0 = vpop.f32.mrb[48].mxu1 }
 0x163   : > { %v2162_v34 = vpop.f32.mrb[45].mxu0  ;;  %v1995_v9 = vadd.f32 %v3750_v0, %v1979_v6  ;;  %v1938_v4 = vpop.f32.mrb[49].mxu1 }
 0x164   : > { %v3765_v39 = vpop.f32.mrb[46].mxu0  ;;  %v2215_v3 = vld [vmem:[#allocation2 + $0x30] sm:$0xff]  ;;  %v1993_v18 = vadd.f32 %v1977_v22, %v1938_v4  ;;  %v3751_v57 = vpop.f32.mrb[50].mxu1 }
 0x165   : > { %v2165_v29 = vpop.f32.mrb[47].mxu0  ;;  %v2231_v63 = vadd.f32 %v3764_v30, %v2215_v3  ;;  %2011 = vst.msk [vmem:[#allocation2 + $0x50] sm:$0xff] %vm458_vm8, %v1995_v9  ;;  %v2213_v62 = vld [vmem:[#allocation2 + $0x20] sm:$0xff]  ;;  %v1996_v19 = vadd.f32 %v3751_v57, %v1980_v48  ;;  %v1941_v23 = vpop.f32.mrb[51].mxu1 }
 0x166   : > { %v2229_v42 = vadd.f32 %v2213_v62, %v2162_v34  ;;  %2009 = vst.msk [vmem:[#allocation2 + $0x40] sm:$0xff] %vm458_vm8, %v1993_v18  ;;  %v2216_v1 = vld [vmem:[#allocation2 + $0x38] sm:$0xff]  ;;  %v1994_v61 = vadd.f32 %v1978_v59, %v1941_v23  ;;  %v2599_v31 = vld [vmem:[#allocation2 + $0x10] sm:$0xff] }
 0x167   : > { %2247 = vst.msk [vmem:[#allocation2 + $0x30] sm:$0xff] %vm458_vm8, %v2231_v63  ;;  %v2232_v36 = vadd.f32 %v3765_v39, %v2216_v1  ;;  %2012 = vst.msk [vmem:[#allocation2 + $0x58] sm:$0xff] %vm458_vm8, %v1996_v19  ;;  %v2214_v20 = vld [vmem:[#allocation2 + $0x28] sm:$0xff]  ;;  %v2597_v21 = vld [vmem:[#allocation2] sm:$0xff] }
 0x168   : > { %2245 = vst.msk [vmem:[#allocation2 + $0x20] sm:$0xff] %vm458_vm8, %v2229_v42  ;;  %v2230_v7 = vadd.f32 %v2214_v20, %v2165_v29  ;;  %2010 = vst.msk [vmem:[#allocation2 + $0x48] sm:$0xff] %vm458_vm8, %v1994_v61  ;;  %v2600_v12 = vld [vmem:[#allocation2 + $0x18] sm:$0xff] }
 0x169   : > { %2248 = vst.msk [vmem:[#allocation2 + $0x38] sm:$0xff] %vm458_vm8, %v2232_v36  ;;  %v2598_v0 = vld [vmem:[#allocation2 + $0x8] sm:$0xff] }
 0x16a   : > { %v3768_v35 = vpop.f32.mrb[48].mxu0  ;;  %2246 = vst.msk [vmem:[#allocation2 + $0x28] sm:$0xff] %vm458_vm8, %v2230_v7  ;;  %v3754_v55 = vpop.f32.mrb[52].mxu1 }
 0x16b   : > { %v2178_v25 = vpop.f32.mrb[49].mxu0  ;;  %v1999_v8 = vadd.f32 %v3754_v55, %v1983_v10  ;;  %v1954_v60 = vpop.f32.mrb[53].mxu1 }
 0x16c   : > { %v3769_v38 = vpop.f32.mrb[50].mxu0  ;;  %v2219_v28 = vld [vmem:[#allocation2 + $0x50] sm:$0xff]  ;;  %v1997_v54 = vadd.f32 %v1981_v15, %v1954_v60  ;;  %v3755_v37 = vpop.f32.mrb[54].mxu1 }
 0x16d   : > { %v2181_v2 = vpop.f32.mrb[51].mxu0  ;;  %v2235_v47 = vadd.f32 %v3768_v35, %v2219_v28  ;;  %2015 = vst.msk [vmem:[#allocation2 + $0x70] sm:$0xff] %vm458_vm8, %v1999_v8  ;;  %v2217_v11 = vld [vmem:[#allocation2 + $0x40] sm:$0xff]  ;;  %v2000_v26 = vadd.f32 %v3755_v37, %v1984_v24  ;;  %v1957_v41 = vpop.f32.mrb[55].mxu1 }
 0x16e   : > { %v2233_v53 = vadd.f32 %v2217_v11, %v2178_v25  ;;  %2013 = vst.msk [vmem:[#allocation2 + $0x60] sm:$0xff] %vm458_vm8, %v1997_v54  ;;  %v2220_v43 = vld [vmem:[#allocation2 + $0x58] sm:$0xff]  ;;  %v1998_v32 = vadd.f32 %v1982_v45, %v1957_v41  ;;  %v2603_v57 = vld [vmem:[#allocation2 + $0x30] sm:$0xff] }
 0x16f   : > { %2251 = vst.msk [vmem:[#allocation2 + $0x50] sm:$0xff] %vm458_vm8, %v2235_v47  ;;  %v2236_v27 = vadd.f32 %v3769_v38, %v2220_v43  ;;  %2016 = vst.msk [vmem:[#allocation2 + $0x78] sm:$0xff] %vm458_vm8, %v2000_v26  ;;  %v2218_v14 = vld [vmem:[#allocation2 + $0x48] sm:$0xff]  ;;  %v2601_v62 = vld [vmem:[#allocation2 + $0x20] sm:$0xff] }
 0x170   : > { %2249 = vst.msk [vmem:[#allocation2 + $0x40] sm:$0xff] %vm458_vm8, %v2233_v53  ;;  %v2234_v50 = vadd.f32 %v2218_v14, %v2181_v2  ;;  %2014 = vst.msk [vmem:[#allocation2 + $0x68] sm:$0xff] %vm458_vm8, %v1998_v32  ;;  %v2604_v1 = vld [vmem:[#allocation2 + $0x38] sm:$0xff] }
 0x171   : > { %2252 = vst.msk [vmem:[#allocation2 + $0x58] sm:$0xff] %vm458_vm8, %v2236_v27  ;;  %v2602_v55 = vld [vmem:[#allocation2 + $0x28] sm:$0xff] }
 0x172   : > { %v3772_v13 = vpop.f32.mrb[52].mxu0  ;;  %2250 = vst.msk [vmem:[#allocation2 + $0x48] sm:$0xff] %vm458_vm8, %v2234_v50  ;;  %v3778_v49 = vpop.f32.mrb[56].mxu1 }
 0x173   : > { %v2194_v58 = vpop.f32.mrb[53].mxu0  ;;  %v2615_v40 = vadd.f32 %v3778_v49, %v2599_v31  ;;  %v2534_v51 = vpop.f32.mrb[57].mxu1 }
 0x174   : > { %v3773_v33 = vpop.f32.mrb[54].mxu0  ;;  %v2223_v56 = vld [vmem:[#allocation2 + $0x70] sm:$0xff]  ;;  %v2613_v44 = vadd.f32 %v2597_v21, %v2534_v51  ;;  %v3779_v17 = vpop.f32.mrb[58].mxu1 }
 0x175   : > { %v2197_v16 = vpop.f32.mrb[55].mxu0  ;;  %v2239_v5 = vadd.f32 %v3772_v13, %v2223_v56  ;;  %v2221_v46 = vld [vmem:[#allocation2 + $0x60] sm:$0xff]  ;;  %2631 = vst.msk [vmem:[#allocation2 + $0x10] sm:$0xff] %vm458_vm8, %v2615_v40  ;;  %v2616_v52 = vadd.f32 %v3779_v17, %v2600_v12  ;;  %v2537_v30 = vpop.f32.mrb[59].mxu1 }
 0x176   : > { %v2237_v6 = vadd.f32 %v2221_v46, %v2194_v58  ;;  %v2224_v34 = vld [vmem:[#allocation2 + $0x78] sm:$0xff]  ;;  %2629 = vst.msk [vmem:[#allocation2] sm:$0xff] %vm458_vm8, %v2613_v44  ;;  %v2614_v9 = vadd.f32 %v2598_v0, %v2537_v30  ;;  %v2607_v24 = vld [vmem:[#allocation2 + $0x50] sm:$0xff] }
 0x177   : > { %2255 = vst.msk [vmem:[#allocation2 + $0x70] sm:$0xff] %vm458_vm8, %v2239_v5  ;;  %v2240_v4 = vadd.f32 %v3773_v33, %v2224_v34  ;;  %v2222_v22 = vld [vmem:[#allocation2 + $0x68] sm:$0xff]  ;;  %2632 = vst.msk [vmem:[#allocation2 + $0x18] sm:$0xff] %vm458_vm8, %v2616_v52  ;;  %v2605_v41 = vld [vmem:[#allocation2 + $0x40] sm:$0xff] }
 0x178   : > { %2253 = vst.msk [vmem:[#allocation2 + $0x60] sm:$0xff] %vm458_vm8, %v2237_v6  ;;  %v2238_v39 = vadd.f32 %v2222_v22, %v2197_v16  ;;  %2630 = vst.msk [vmem:[#allocation2 + $0x8] sm:$0xff] %vm458_vm8, %v2614_v9  ;;  %v2608_v14 = vld [vmem:[#allocation2 + $0x58] sm:$0xff] }
 0x179   : > { %2256 = vst.msk [vmem:[#allocation2 + $0x78] sm:$0xff] %vm458_vm8, %v2240_v4  ;;  %v2606_v17 = vld [vmem:[#allocation2 + $0x48] sm:$0xff] }
 0x17a   : > { %v3796_v3 = vpop.f32.mrb[56].mxu0  ;;  %2254 = vst.msk [vmem:[#allocation2 + $0x68] sm:$0xff] %vm458_vm8, %v2238_v39  ;;  %v3782_v18 = vpop.f32.mrb[60].mxu1 }
 0x17b   : > { %v2794_v48 = vpop.f32.mrb[57].mxu0  ;;  %v2619_v29 = vadd.f32 %v3782_v18, %v2603_v57  ;;  %v2550_v63 = vpop.f32.mrb[61].mxu1 }
 0x17c   : > { %v3797_v19 = vpop.f32.mrb[58].mxu0  ;;  %v2859_v23 = vld [vmem:[#allocation2 + $0x10] sm:$0xff]  ;;  %v2617_v59 = vadd.f32 %v2601_v62, %v2550_v63  ;;  %v3783_v42 = vpop.f32.mrb[62].mxu1 }
 0x17d   : > { %v2797_v61 = vpop.f32.mrb[59].mxu0  ;;  %v2875_v36 = vadd.f32 %v3796_v3, %v2859_v23  ;;  %2635 = vst.msk [vmem:[#allocation2 + $0x30] sm:$0xff] %vm458_vm8, %v2619_v29  ;;  %v2857_v20 = vld [vmem:[#allocation2] sm:$0xff]  ;;  %v2620_v7 = vadd.f32 %v3783_v42, %v2604_v1  ;;  %v2553_v35 = vpop.f32.mrb[63].mxu1 }
 0x17e   : > { %v2873_v10 = vadd.f32 %v2857_v20, %v2794_v48  ;;  %2633 = vst.msk [vmem:[#allocation2 + $0x20] sm:$0xff] %vm458_vm8, %v2617_v59  ;;  %v2860_v25 = vld [vmem:[#allocation2 + $0x18] sm:$0xff]  ;;  %v2618_v8 = vadd.f32 %v2602_v55, %v2553_v35  ;;  %v2611_v59 = vld [vmem:[#allocation2 + $0x70] sm:$0xff] }
 0x17f   : > { %2891 = vst.msk [vmem:[#allocation2 + $0x10] sm:$0xff] %vm458_vm8, %v2875_v36  ;;  %v2876_v60 = vadd.f32 %v3797_v19, %v2860_v25  ;;  %2636 = vst.msk [vmem:[#allocation2 + $0x38] sm:$0xff] %vm458_vm8, %v2620_v7  ;;  %v2858_v15 = vld [vmem:[#allocation2 + $0x8] sm:$0xff] }
 0x180   : > { %2889 = vst.msk [vmem:[#allocation2] sm:$0xff] %vm458_vm8, %v2873_v10  ;;  %v2874_v38 = vadd.f32 %v2858_v15, %v2797_v61  ;;  %2634 = vst.msk [vmem:[#allocation2 + $0x28] sm:$0xff] %vm458_vm8, %v2618_v8  ;;  %v2609_v10 = vld [vmem:[#allocation2 + $0x60] sm:$0xff] }
 0x181   : > { %2892 = vst.msk [vmem:[#allocation2 + $0x18] sm:$0xff] %vm458_vm8, %v2876_v60 }
 0x182   : > { %v3800_v28 = vpop.f32.mrb[60].mxu0  ;;  %2890 = vst.msk [vmem:[#allocation2 + $0x8] sm:$0xff] %vm458_vm8, %v2874_v38 }
 0x183   : > { %v2810_v54 = vpop.f32.mrb[61].mxu0  ;;  %v3786_v37 = vpop.f32.mrb[64].mxu1 }
 0x184   : > { %v3801_v2 = vpop.f32.mrb[62].mxu0  ;;  %v2863_v47 = vld [vmem:[#allocation2 + $0x30] sm:$0xff]  ;;  %v2623_v11 = vadd.f32 %v3786_v37, %v2607_v24  ;;  %v2566_v26 = vpop.f32.mrb[65].mxu1  ;;  %v2612_v37 = vld [vmem:[#allocation2 + $0x78] sm:$0xff] }
 0x185   : > { %v2813_v45 = vpop.f32.mrb[63].mxu0  ;;  %v2879_v53 = vadd.f32 %v3800_v28, %v2863_v47  ;;  %v2861_v43 = vld [vmem:[#allocation2 + $0x20] sm:$0xff]  ;;  %v2621_v32 = vadd.f32 %v2605_v41, %v2566_v26  ;;  %v3787_v27 = vpop.f32.mrb[66].mxu1  ;;  %v2610_v41 = vld [vmem:[#allocation2 + $0x68] sm:$0xff] }
 0x186   : > { %v2907_v50 = vld [vmem:[#allocation2 + $0x10] sm:$0xff]  ;;  %2639 = vst.msk [vmem:[#allocation2 + $0x50] sm:$0xff] %vm458_vm8, %v2623_v11  ;;  %v2877_v13 = vadd.f32 %v2861_v43, %v2810_v54  ;;  %v2864_v58 = vld [vmem:[#allocation2 + $0x38] sm:$0xff]  ;;  %v2624_v49 = vadd.f32 %v3787_v27, %v2608_v14  ;;  %v2569_v31 = vpop.f32.mrb[67].mxu1 }
 0x187   : > { %v3553_v40 = vpack.c.bf16 %v2907_v50, %v2907_v50  ;;  %v2905_v33 = vld [vmem:[#allocation2] sm:$0xff]  ;;  %2895 = vst.msk [vmem:[#allocation2 + $0x30] sm:$0xff] %vm458_vm8, %v2879_v53  ;;  %2637 = vst.msk [vmem:[#allocation2 + $0x40] sm:$0xff] %vm458_vm8, %v2621_v32  ;;  %v2880_v51 = vadd.f32 %v3801_v2, %v2864_v58  ;;  %v2862_v21 = vld [vmem:[#allocation2 + $0x28] sm:$0xff]  ;;  %v2622_v52 = vadd.f32 %v2606_v17, %v2569_v31  ;;  %v3005_v3 = vsel %vm458_vm8, %v2907_v50, 0.0 }
 0x188   : > { %v3551_v56 = vpack.c.bf16 %v2905_v33, %v2905_v33  ;;  %v2908_v44 = vld [vmem:[#allocation2 + $0x18] sm:$0xff]  ;;  %2893 = vst.msk [vmem:[#allocation2 + $0x20] sm:$0xff] %vm458_vm8, %v2877_v13  ;;  %2640 = vst.msk [vmem:[#allocation2 + $0x58] sm:$0xff] %vm458_vm8, %v2624_v49  ;;  %v2878_v16 = vadd.f32 %v2862_v21, %v2813_v45  ;;  %v3039_v12 = vmul.f32 %v2905_v33, %v2905_v33  ;;  %v3002_v0 = vsel %vm458_vm8, %v2905_v33, 0.0 }
 0x189   : > { %v3554_v5 = vpack.c.bf16 %v2908_v44, %v2908_v44  ;;  %v2906_v46 = vld [vmem:[#allocation2 + $0x8] sm:$0xff]  ;;  %2896 = vst.msk [vmem:[#allocation2 + $0x38] sm:$0xff] %vm458_vm8, %v2880_v51  ;;  %2638 = vst.msk [vmem:[#allocation2 + $0x48] sm:$0xff] %vm458_vm8, %v2622_v52  ;;  %v3041_v62 = vmul.f32 %v2907_v50, %v2907_v50  ;;  %v3007_v61 = vsel %vm458_vm8, %v2908_v44, 0.0  ;;  %v3042_v47 = vmul.f32 %v2908_v44, %v2908_v44 }
 0x18a   : > { %v3804_v30 = vpop.f32.mrb[64].mxu0  ;;  %2988 = vst.msk [vmem:[%s5199_s14 + $0x8] sm:$0xf] %vm2985_vm9, %v3553_v40  ;;  %v3552_v6 = vpack.c.bf16 %v2906_v46, %v2906_v46  ;;  %v3003_v34 = vsel %vm458_vm8, %v2906_v46, 0.0  ;;  %v3040_v9 = vmul.f32 %v2906_v46, %v2906_v46  ;;  %2986 = vst.msk [vmem:[%s5199_s14] sm:$0xf] %vm2985_vm9, %v3551_v56 }
 0x18b   : > { %2894 = vst.msk [vmem:[#allocation2 + $0x28] sm:$0xff] %vm458_vm8, %v2878_v16  ;;  %v2826_v4 = vpop.f32.mrb[65].mxu0  ;;  %v3004_v22 = vadd.f32 %v3003_v34, %v3002_v0  ;;  %v3055_v48 = vsel %vm458_vm8, %v3039_v12, 0.0  ;;  %v3058_v51 = vsel %vm458_vm8, %v3041_v62, 0.0  ;;  %v3060_v12 = vsel %vm458_vm8, %v3042_v47, 0.0 }
 0x18c   : > { %v3805_v39 = vpop.f32.mrb[66].mxu0  ;;  %2989 = vst.msk [vmem:[%s5199_s14 + $0xc] sm:$0xf] %vm2985_vm9, %v3554_v5  ;;  %v3056_v18 = vsel %vm458_vm8, %v3040_v9, 0.0  ;;  %2987 = vst.msk [vmem:[%s5199_s14 + $0x4] sm:$0xf] %vm2985_vm9, %v3552_v6 }
 0x18d   : > { %v2829_v57 = vpop.f32.mrb[67].mxu0  ;;  %v2867_v29 = vld [vmem:[#allocation2 + $0x50] sm:$0xff]  ;;  %v3006_v63 = vadd.f32 %v3005_v3, %v3004_v22  ;;  %v3057_v36 = vadd.f32 %v3056_v18, %v3055_v48 }
 0x18e   : > { %v2883_v19 = vadd.f32 %v3804_v30, %v2867_v29  ;;  %v3790_v23 = vpop.f32.mrb[68].mxu1  ;;  %v2865_v42 = vld [vmem:[#allocation2 + $0x40] sm:$0xff]  ;;  %v2911_v1 = vld [vmem:[#allocation2 + $0x30] sm:$0xff] }
 0x18f   : > { %v2909_v20 = vld [vmem:[#allocation2 + $0x20] sm:$0xff]  ;;  %v2627_v7 = vadd.f32 %v3790_v23, %v2611_v59  ;;  %v2881_v35 = vadd.f32 %v2865_v42, %v2826_v4  ;;  %v2582_v55 = vpop.f32.mrb[69].mxu1  ;;  %v2868_v25 = vld [vmem:[#allocation2 + $0x58] sm:$0xff]  ;;  %v3557_v8 = vpack.c.bf16 %v2911_v1, %v2911_v1  ;;  %v3008_v60 = vadd.f32 %v3007_v61, %v3006_v63 }
 0x190   : > { %v3555_v15 = vpack.c.bf16 %v2909_v20, %v2909_v20  ;;  %2899 = vst.msk [vmem:[#allocation2 + $0x50] sm:$0xff] %vm458_vm8, %v2883_v19  ;;  %v2625_v38 = vadd.f32 %v2609_v10, %v2582_v55  ;;  %v2884_v28 = vadd.f32 %v3805_v39, %v2868_v25  ;;  %v3791_v54 = vpop.f32.mrb[70].mxu1  ;;  %v2912_v24 = vld [vmem:[#allocation2 + $0x38] sm:$0xff]  ;;  %v3009_v2 = vsel %vm458_vm8, %v2909_v20, 0.0  ;;  %v2866_v27 = vld [vmem:[#allocation2 + $0x48] sm:$0xff] }
 0x191   : > { %2643 = vst.msk [vmem:[#allocation2 + $0x70] sm:$0xff] %vm458_vm8, %v2627_v7  ;;  %2897 = vst.msk [vmem:[#allocation2 + $0x40] sm:$0xff] %vm458_vm8, %v2881_v35  ;;  %v2628_v11 = vadd.f32 %v3791_v54, %v2612_v37  ;;  %v2585_v26 = vpop.f32.mrb[71].mxu1  ;;  %v3558_v43 = vpack.c.bf16 %v2912_v24, %v2912_v24  ;;  %v3010_v32 = vadd.f32 %v3009_v2, %v3008_v60  ;;  %v3013_v56 = vsel %vm458_vm8, %v2911_v1, 0.0 }
 0x192   : > { %v3808_v45 = vpop.f32.mrb[68].mxu0  ;;  %v2910_v53 = vld [vmem:[#allocation2 + $0x28] sm:$0xff]  ;;  %2992 = vst.msk [vmem:[%s5199_s14 + $0x18] sm:$0xf] %vm2985_vm9, %v3557_v8  ;;  %v2626_v14 = vadd.f32 %v2610_v41, %v2585_v26  ;;  %2990 = vst.msk [vmem:[%s5199_s14 + $0x10] sm:$0xf] %vm2985_vm9, %v3555_v15  ;;  %v2882_v49 = vadd.f32 %v2866_v27, %v2829_v57  ;;  %v3043_v33 = vmul.f32 %v2909_v20, %v2909_v20 }
 0x193   : > { %2641 = vst.msk [vmem:[#allocation2 + $0x60] sm:$0xff] %vm458_vm8, %v2625_v38  ;;  %2900 = vst.msk [vmem:[#allocation2 + $0x58] sm:$0xff] %vm458_vm8, %v2884_v28  ;;  %v2842_v50 = vpop.f32.mrb[69].mxu0  ;;  %v3556_v13 = vpack.c.bf16 %v2910_v53, %v2910_v53  ;;  %v3011_v58 = vsel %vm458_vm8, %v2910_v53, 0.0  ;;  %v3044_v44 = vmul.f32 %v2910_v53, %v2910_v53  ;;  %v3059_v16 = vadd.f32 %v3058_v51, %v3057_v36 }
 0x194   : > { %2644 = vst.msk [vmem:[#allocation2 + $0x78] sm:$0xff] %vm458_vm8, %v2628_v11  ;;  %v3809_v31 = vpop.f32.mrb[70].mxu0  ;;  %v3012_v40 = vadd.f32 %v3011_v58, %v3010_v32  ;;  %2642 = vst.msk [vmem:[#allocation2 + $0x68] sm:$0xff] %vm458_vm8, %v2626_v14  ;;  %v3062_v5 = vsel %vm458_vm8, %v3043_v33, 0.0  ;;  %v3015_v46 = vsel %vm458_vm8, %v2912_v24, 0.0  ;;  %v3045_v4 = vmul.f32 %v2911_v1, %v2911_v1 }
 0x195   : > { %2993 = vst.msk [vmem:[%s5199_s14 + $0x1c] sm:$0xf] %vm2985_vm9, %v3558_v43  ;;  %v2845_v21 = vpop.f32.mrb[71].mxu0  ;;  %2991 = vst.msk [vmem:[%s5199_s14 + $0x14] sm:$0xf] %vm2985_vm9, %v3556_v13  ;;  %v3061_v52 = vadd.f32 %v3060_v12, %v3059_v16  ;;  %v3064_v39 = vsel %vm458_vm8, %v3044_v44, 0.0  ;;  %v3046_v63 = vmul.f32 %v2912_v24, %v2912_v24 }
 0x196   : > { %2898 = vst.msk [vmem:[#allocation2 + $0x48] sm:$0xff] %vm458_vm8, %v2882_v49  ;;  %v3014_v17 = vadd.f32 %v3013_v56, %v3012_v40  ;;  %v3066_v35 = vsel %vm458_vm8, %v3045_v4, 0.0 }
 0x197   : > { %v2915_v30 = vld [vmem:[#allocation2 + $0x50] sm:$0xff]  ;;  %v3063_v22 = vadd.f32 %v3062_v5, %v3061_v52  ;;  %v3068_v15 = vsel %vm458_vm8, %v3046_v63, 0.0 }
 0x198   : > { %v3016_v0 = vadd.f32 %v3015_v46, %v3014_v17  ;;  %v2871_v6 = vld [vmem:[#allocation2 + $0x70] sm:$0xff]  ;;  %v2913_v34 = vld [vmem:[#allocation2 + $0x40] sm:$0xff]  ;;  %v3561_v9 = vpack.c.bf16 %v2915_v30, %v2915_v30  ;;  %v3021_v28 = vsel %vm458_vm8, %v2915_v30, 0.0  ;;  %v3049_v47 = vmul.f32 %v2915_v30, %v2915_v30 }
 0x199   : > { %v2887_v3 = vadd.f32 %v3808_v45, %v2871_v6  ;;  %v3559_v48 = vpack.c.bf16 %v2913_v34, %v2913_v34  ;;  %v3017_v29 = vsel %vm458_vm8, %v2913_v34, 0.0  ;;  %v3047_v42 = vmul.f32 %v2913_v34, %v2913_v34 }
 0x19a   : > { %v2869_v18 = vld [vmem:[#allocation2 + $0x60] sm:$0xff]  ;;  %v2916_v57 = vld [vmem:[#allocation2 + $0x58] sm:$0xff]  ;;  %2996 = vst.msk [vmem:[%s5199_s14 + $0x28] sm:$0xf] %vm2985_vm9, %v3561_v9  ;;  %v3018_v59 = vadd.f32 %v3017_v29, %v3016_v0  ;;  %v3065_v36 = vadd.f32 %v3064_v39, %v3063_v22  ;;  %v3074_v40 = vsel %vm458_vm8, %v3049_v47, 0.0 }
 0x19b   : > { %v2885_v62 = vadd.f32 %v2869_v18, %v2842_v50  ;;  %v2872_v19 = vld [vmem:[#allocation2 + $0x78] sm:$0xff]  ;;  %v3562_v23 = vpack.c.bf16 %v2916_v57, %v2916_v57  ;;  %2903 = vst.msk [vmem:[#allocation2 + $0x70] sm:$0xff] %vm458_vm8, %v2887_v3  ;;  %v2870_v61 = vld [vmem:[#allocation2 + $0x68] sm:$0xff]  ;;  %v3070_v38 = vsel %vm458_vm8, %v3047_v42, 0.0  ;;  %v3023_v2 = vsel %vm458_vm8, %v2916_v57, 0.0 }
 0x19c   : > { %v2888_v1 = vadd.f32 %v3809_v31, %v2872_v19  ;;  %2994 = vst.msk [vmem:[%s5199_s14 + $0x20] sm:$0xf] %vm2985_vm9, %v3559_v48  ;;  %v2886_v20 = vadd.f32 %v2870_v61, %v2845_v21  ;;  %v3067_v8 = vadd.f32 %v3066_v35, %v3065_v36  ;;  %v3050_v43 = vmul.f32 %v2916_v57, %v2916_v57 }
 0x19d   : > { %2901 = vst.msk [vmem:[#allocation2 + $0x60] sm:$0xff] %vm458_vm8, %v2885_v62  ;;  %v2914_v7 = vld [vmem:[#allocation2 + $0x48] sm:$0xff] }
 0x19e   : > { %2997 = vst.msk [vmem:[%s5199_s14 + $0x2c] sm:$0xf] %vm2985_vm9, %v3562_v23  ;;  %v3560_v55 = vpack.c.bf16 %v2914_v7, %v2914_v7  ;;  %v3019_v10 = vsel %vm458_vm8, %v2914_v7, 0.0  ;;  %v3048_v25 = vmul.f32 %v2914_v7, %v2914_v7  ;;  %v3069_v54 = vadd.f32 %v3068_v15, %v3067_v8 }
 0x19f   : > { %2904 = vst.msk [vmem:[#allocation2 + $0x78] sm:$0xff] %vm458_vm8, %v2888_v1  ;;  %2902 = vst.msk [vmem:[#allocation2 + $0x68] sm:$0xff] %vm458_vm8, %v2886_v20  ;;  %v3020_v60 = vadd.f32 %v3019_v10, %v3018_v59  ;;  %v3076_v16 = vsel %vm458_vm8, %v3050_v43, 0.0 }
 0x1a0   : > { %2995 = vst.msk [vmem:[%s5199_s14 + $0x24] sm:$0xf] %vm2985_vm9, %v3560_v55  ;;  %v3072_v24 = vsel %vm458_vm8, %v3048_v25, 0.0  ;;  %v3071_v11 = vadd.f32 %v3070_v38, %v3069_v54 }
 0x1a1   : > { %v3022_v37 = vadd.f32 %v3021_v28, %v3020_v60 }
 0x1a2   : > { %v2919_v26 = vld [vmem:[#allocation2 + $0x70] sm:$0xff]  ;;  %v3073_v32 = vadd.f32 %v3072_v24, %v3071_v11 }
 0x1a3   : > { %v3024_v41 = vadd.f32 %v3023_v2, %v3022_v37  ;;  %v3565_v53 = vpack.c.bf16 %v2919_v26, %v2919_v26  ;;  %v3029_v12 = vsel %vm458_vm8, %v2919_v26, 0.0  ;;  %v3053_v52 = vmul.f32 %v2919_v26, %v2919_v26 }
 0x1a4   : > { %v2917_v45 = vld [vmem:[#allocation2 + $0x60] sm:$0xff]  ;;  %v3075_v56 = vadd.f32 %v3074_v40, %v3073_v32 }
 0x1a5   : > { %v3563_v14 = vpack.c.bf16 %v2917_v45, %v2917_v45  ;;  %v3025_v50 = vsel %vm458_vm8, %v2917_v45, 0.0  ;;  %v3051_v13 = vmul.f32 %v2917_v45, %v2917_v45  ;;  %3000 = vst.msk [vmem:[%s5199_s14 + $0x38] sm:$0xf] %vm2985_vm9, %v3565_v53  ;;  %v3082_v39 = vsel %vm458_vm8, %v3053_v52, 0.0 }
 0x1a6   : > { %v2920_v27 = vld [vmem:[#allocation2 + $0x78] sm:$0xff]  ;;  %v2918_v58 = vld [vmem:[#allocation2 + $0x68] sm:$0xff]  ;;  %v3026_v31 = vadd.f32 %v3025_v50, %v3024_v41  ;;  %v3077_v5 = vadd.f32 %v3076_v16, %v3075_v56 }
 0x1a7   : > { %v3566_v49 = vpack.c.bf16 %v2920_v27, %v2920_v27  ;;  %v3564_v33 = vpack.c.bf16 %v2918_v58, %v2918_v58  ;;  %2998 = vst.msk [vmem:[%s5199_s14 + $0x30] sm:$0xf] %vm2985_vm9, %v3563_v14  ;;  %v3027_v51 = vsel %vm458_vm8, %v2918_v58, 0.0  ;;  %v3052_v21 = vmul.f32 %v2918_v58, %v2918_v58 }
 0x1a8   : > { %v3028_v44 = vadd.f32 %v3027_v51, %v3026_v31  ;;  %v3078_v17 = vsel %vm458_vm8, %v3051_v13, 0.0  ;;  %v3031_v0 = vsel %vm458_vm8, %v2920_v27, 0.0  ;;  %v3054_v9 = vmul.f32 %v2920_v27, %v2920_v27 }
 0x1a9   : > { %3001 = vst.msk [vmem:[%s5199_s14 + $0x3c] sm:$0xf] %vm2985_vm9, %v3566_v49  ;;  %2999 = vst.msk [vmem:[%s5199_s14 + $0x34] sm:$0xf] %vm2985_vm9, %v3564_v33  ;;  %v3080_v30 = vsel %vm458_vm8, %v3052_v21, 0.0  ;;  %v3079_v6 = vadd.f32 %v3078_v17, %v3077_v5  ;;  %s3927_s14 = sshll.u32 %s4051_s13, 4  ;;  %s3928_s14 = int_to_ptr.vmem [resolvable:$false] %s3927_s14 }
 0x1aa   : > { %v3030_v46 = vadd.f32 %v3029_v12, %v3028_v44  ;;  %v3084_v57 = vsel %vm458_vm8, %v3054_v9, 0.0  ;;  %s3929_s7 = scalar_lea.vmem %s3928_s14, 256  ;;  %p3930_p3 = scmp.lt.s32.totalorder %s5296_s6, %s3928_s14 }
 0x1ab   : > { %v3081_v4 = vadd.f32 %v3080_v30, %v3079_v6  ;;  %p3931_p4 = scmp.lt.s32.totalorder %s3929_s7, %s3923_s12 }
 0x1ac   : > { %v3032_v34 = vadd.f32 %v3031_v0, %v3030_v46 }
 0x1ad   : > { %v3083_v3 = vadd.f32 %v3082_v39, %v3081_v4  ;;  %p3932_p6 = por %p3931_p4, %p3930_p3 }
 0x1ae   : > { %v3033_v22 = vrot.slane %v3032_v34, 4 }
 0x1af   : > { %v3085_v48 = vadd.f32 %v3084_v57, %v3083_v3  ;;  %p3933_p8 = pnand %p3932_p6, %p3926_p2 }
 0x1b0   : > { %v3034_v18 = vadd.f32 %v3033_v22, %v3032_v34 }
 0x1b1   : > { %v3086_v63 = vrot.slane %v3085_v48, 4 }
 0x1b2   : > { %v3035_v29 = vrot.slane %v3034_v18, 2 }
 0x1b3   : > { %v3087_v19 = vadd.f32 %v3086_v63, %v3085_v48 }
 0x1b4   : > { %v3036_v62 = vadd.f32 %v3035_v29, %v3034_v18 }
 0x1b5   : > { %v3088_v59 = vrot.slane %v3087_v19, 2 }
 0x1b6   : > { %v3037_v23 = vrot.slane %v3036_v62, 1 }
 0x1b7   : > { %v3089_v1 = vadd.f32 %v3088_v59, %v3087_v19 }
 0x1b8   : > { %v3038_v42 = vadd.f32 %v3037_v23, %v3036_v62 }
 0x1ba   : > { %3092 = vst.msk [vmem:[%s227_s26] sm:$0xff] %vm458_vm8, %v3038_v42 }
 0x1bb   : > { %3936 = shalt.err (!%p3933_p8)
}
 0x1bc   : > { %s3937_s28 = scalar_lea.hbm %s5294_s27, 128  ;;  %s3941_s13 = scalar_lea.hbm %s5390_s3, 512 }
 0x1bd   : > { %p3938_p9 = scmp.ne.s32.totalorder %s5294_s27, %s3937_s28  ;;  %p3942_p12 = scmp.lt.u32.totalorder %s5294_s27, %s5390_s3 }
 0x1be   : > { %p3943_p13 = scmp.lt.u32.totalorder %s3941_s13, %s3937_s28  ;;  %p3945_p1 = scmp.lt.u32.totalorder %s3937_s28, %s5294_s27 }
 0x1bf   : > { %p3939_p10 = pnand %p3938_p9, %p4131_p5 }
 0x1c0   : > { %p3944_p0 = por %p3943_p13, %p3942_p12 }
 0x1c1   : > { %p3940_p11 = pneg %p3939_p10 }
 0x1c2   : > { %p3946_p2 = por %p3945_p1, %p3944_p0 }
 0x1c4   : > { %p3947_p3 = pnand %p3946_p2, %p3940_p11 }
 0x1c6   : > { %3950 = shalt.err (!%p3947_p3)
}
 0x1c7   : > { %3823 = dma.vmem_to_hbm [thread:$0]  (%p4131_p5), %s5296_s6, 128, %s5294_s27, %s3102_s11   ;;  %v3090_v61 = vrot.slane %v3089_v1, 1 }
 0x1c8   : > { %s5329_s7 = scalar_lea.hbm %s5391_s4, %s3545_s5  ;;  %s5409_s28 = sshll.u32 %s5299_s18, 4  ;;  %s5333_s28 = int_to_ptr.vmem [resolvable:$true] %s5409_s28 }
 0x1c9   : > { %v3091_v36 = vadd.f32 %v3090_v61, %v3089_v1  ;;  %s3107_s26 = scalar_lea.sflag [#allocation6], %s5283_s23  ;;  %s3951_s10 = scalar_lea.vmem %s5333_s28, 128 }
 0x1ca   : > { %p3952_p4 = scmp.ne.s32.totalorder %s5333_s28, %s3951_s10  ;;  %s4052_s8 = smov [#allocation5]  }
 0x1cb   : > { %3093 = vst.msk [vmem:[%s5299_s18] sm:$0xff] %vm458_vm8, %v3091_v36  ;;  %s3955_s6 = sshll.u32 %s4052_s8, 4  ;;  %s3956_s6 = int_to_ptr.vmem [resolvable:$false] %s3955_s6 }
 0x1cc   : > { %p3953_p6 = pnand %p3952_p4, %p4131_p5  ;;  %s3957_s27 = scalar_lea.vmem %s3956_s6, 256 }
 0x1cd   : > { %p3958_p9 = scmp.lt.s32.totalorder %s5333_s28, %s3956_s6  ;;  %p3959_p10 = scmp.lt.s32.totalorder %s3957_s27, %s3951_s10 }
 0x1ce   : > { %p3954_p8 = pneg %p3953_p6 }
 0x1cf   : > { %p3960_p11 = por %p3959_p10, %p3958_p9 }
 0x1d1   : > { %p3961_p12 = pnand %p3960_p11, %p3954_p8 }
 0x1d3   : > { %3964 = shalt.err (!%p3961_p12)
}
 0x1d4   : > { %s3965_s23 = scalar_lea.hbm %s5329_s7, 128  ;;  %s3969_s11 = scalar_lea.hbm %s5391_s4, 512 }
 0x1d5   : > { %p3966_p13 = scmp.ne.s32.totalorder %s5329_s7, %s3965_s23  ;;  %p3970_p2 = scmp.lt.u32.totalorder %s5329_s7, %s5391_s4 }
 0x1d6   : > { %p3971_p3 = scmp.lt.u32.totalorder %s3969_s11, %s3965_s23  ;;  %p3973_p6 = scmp.lt.u32.totalorder %s3965_s23, %s5329_s7 }
 0x1d7   : > { %p3967_p0 = pnand %p3966_p13, %p4131_p5 }
 0x1d8   : > { %p3972_p4 = por %p3971_p3, %p3970_p2 }
 0x1d9   : > { %p3968_p1 = pneg %p3967_p0 }
 0x1da   : > { %p3974_p8 = por %p3973_p6, %p3972_p4 }
 0x1dc   : > { %p3975_p9 = pnand %p3974_p8, %p3968_p1 }
 0x1de   : > { %3978 = shalt.err (!%p3975_p9)
}
 0x1df   : > { %3824 = dma.vmem_to_hbm [thread:$0]  (%p4131_p5), %s5333_s28, 128, %s5329_s7, %s3107_s26  }
 0x1e0 PF: > { %p3834_p10 = scmp.ge.s32.totalorder %s4049_s22, 2  ;;  %s3165_s19 = sand.u32 1, %s4021_s15  }
 0x1e1   : > { %s3166_s12 = scalar_lea.sflag [#allocation4], %s3165_s19 }
 0x1e2   : > { %p3828_p11 = pnand %p3834_p10, %p4137_p7 }
 0x1e4   : > { %4012 = dma.done.wait (!%p3828_p11), %s3166_s12, 128  }
 0x1e5   : > { %4014 = vsyncadd (!%p3828_p11), %s3166_s12, 4294967168  ;;  %s3175_s10 = scalar_lea.sflag [#allocation6], %s3165_s19 }
 0x1e6   : > { %4016 = dma.done.wait (!%p3828_p11), %s3175_s10, 128  }
 0x1e7   : > { %4018 = vsyncadd (!%p3828_p11), %s3175_s10, 4294967168  ;;  %s21_s22 = sadd.s32 1, %s4049_s22   ;;  %s5410_s15 = smov %s4025_s16 }
 0x1e8   : > { %p18_p12 = scmp.ge.s32.totalorder %s21_s22, 6   ;;  %s5411_s16 = smov %s4029_s17 }
 0x1e9   : > { %s5412_s17 = smov %s4147_s9  ;;  %s5413_s18 = smov %s4041_s20 }
 0x1ea   : > { %s5414_s19 = smov %s4045_s21  ;;  %s5415_s20 = smov %s5418_s24 }
 0x1eb   : > { %s5416_s21 = smov %s5422_s25  ;;  %20 = sbr.rel (!%p18_p12) target bundleno = 7 (0x7), region = 95 }
 0x1f2   :  { %3180 = vsyncpa [#allocation4], 1 }
 0x1f3   :  { %3182 = vsyncpa [#allocation4 + $0x1], 1 }
 0x1f4   :  { %3183 = vsyncpa [#allocation6], 1 }
 0x1f5   :  { %3185 = vsyncpa [#allocation6 + $0x1], 1 }

</bundles_post_ra>
